<compile_context>
chip_gen: v7x
topology: tpu7x:2x2x1
jax: 0.10.0
libtpu: 0.0.40
codegen_flags: <defaults>
</compile_context>

<pallas_src>
import functools

import jax
import jax.numpy as jnp
import numpy as np
from jax import lax
from jax.experimental import pallas as pl
from jax.experimental.pallas import tpu as pltpu

_C1 = 0.01 ** 2
_C2 = 0.03 ** 2
# 1/9 avg-pool normalization absorbed at 9x statistic scale (81^2 cancels in
# the SSIM_n / SSIM_d ratio).
_C1_81 = 81.0 * _C1
_C2_81 = 81.0 * _C2


def _reflect_shift_pm1(a, axis, size, use_roll):
    """Return (prev, nxt) with prev[i] = a[r(i-1)], nxt[i] = a[r(i+1)] along
    `axis`, where r(.) is the ReflectionPad(1) index map (r(-1)=1,
    r(size)=size-2).  Arrays keep their original (lane-aligned) width."""
    if use_roll:
        fwd = pltpu.roll(a, 1, axis)          # fwd[i] = a[i-1]  (wraps at i=0)
        bwd = pltpu.roll(a, size - 1, axis)   # bwd[i] = a[i+1]  (wraps at end)
        idx = lax.broadcasted_iota(jnp.int32, a.shape, axis)
        prev = jnp.where(idx == 0, bwd, fwd)         # reflect: prev[0]  = a[1]
        nxt = jnp.where(idx == size - 1, fwd, bwd)   # reflect: nxt[-1] = a[-2]
    else:
        # Fallback for small / unaligned dims (single-vreg scale data).
        def sl(lo, hi):
            return lax.slice_in_dim(a, lo, hi, axis=axis)
        prev = jnp.concatenate([sl(1, 2), sl(0, size - 1)], axis=axis)
        nxt = jnp.concatenate([sl(1, size), sl(size - 2, size - 1)], axis=axis)
    return prev, nxt


def _masked_l1_ssim_kernel(x_ref, y_ref, m_ref, l1_ref, ssim_ref, *,
                           lane_roll, sub_roll):
    _, C, H, W = x_ref.shape
    x = x_ref[0].astype(jnp.float32)   # (C, H, W)
    y = y_ref[0].astype(jnp.float32)
    m = m_ref[0].astype(jnp.float32)

    # Products first; the reflect shift commutes with elementwise products, so
    # shifting xx/yy/xy replaces 6 VALU multiplies with cheap XLU shifts.
    xx = x * x
    yy = y * y
    xy = x * y

    def hsum3(a):                         # 3-tap reflect box sum along W (lanes)
        p, n = _reflect_shift_pm1(a, 2, W, lane_roll)
        return p + a + n

    def vsum3(a):                         # 3-tap reflect box sum along H (sublanes)
        p, n = _reflect_shift_pm1(a, 1, H, sub_roll)
        return p + a + n

    # Separable 3x3 reflect box sums == 9x the avg-pooled SSIM statistics.
    mx = vsum3(hsum3(x))     # 9 * mu_x
    my = vsum3(hsum3(y))     # 9 * mu_y
    exx = vsum3(hsum3(xx))   # 9 * E[x^2]
    eyy = vsum3(hsum3(yy))   # 9 * E[y^2]
    exy = vsum3(hsum3(xy))   # 9 * E[x*y]

    # Reused mu products.
    mxy = mx * my
    mx2 = mx * mx
    my2 = my * my
    t2 = mxy + mxy           # 2 * (9 mu_x)(9 mu_y)
    s2 = mx2 + my2

    # SSIM_n / SSIM_d at 81x scale (the scale cancels in the ratio).
    n = (t2 + _C1_81) * (18.0 * exy - t2 + _C2_81)
    d = (s2 + _C1_81) * (9.0 * (exx + eyy) - s2 + _C2_81)

    # d > 0 (C2 term dominates any rounding); approx reciprocal on the EUP
    # slot + one Newton step restores ~2^-24 relative accuracy.
    r = pl.reciprocal(d, approx=True)
    r = r * (2.0 - d * r)
    ssim_map = jnp.clip((1.0 - n * r) * 0.5, 0.0, 1.0)

    # Masked reductions, normalized per sample (exact scalar divide is cheap).
    l1_sum = jnp.sum(jnp.abs(x - y) * m)
    ssim_sum = jnp.sum(ssim_map * m)
    inv_numel = 1.0 / (jnp.sum(m) + 1e-7)

    # Lane-dense (1, 8, 128) per-sample output tiles (parallel-grid safe,
    # unmasked full-tile stores).
    l1_ref[...] = jnp.full(l1_ref.shape, l1_sum * inv_numel, dtype=jnp.float32)
    ssim_ref[...] = jnp.full(ssim_ref.shape, ssim_sum * inv_numel,
                             dtype=jnp.float32)


def _vmem_limit_bytes():
    """Generation-aware scoped-VMEM limit: ~100 MiB on 128-MiB chips
    (v5e/v6e), ~48 MiB on 64-MiB chips (v7x); conservative fallback 64 MiB."""
    default = 64 * 1024 * 1024
    try:
        cap = getattr(pltpu.get_tpu_info(), "vmem_capacity_bytes", None)
        if not cap:
            return default
        return int(min(100 * 1024 * 1024,
                       max(32 * 1024 * 1024, cap - 16 * 1024 * 1024)))
    except Exception:
        return default


def masked_l1_ssim_loss(output, target, mask, ssim_factor=0.85):
    B, C, H, W = output.shape
    assert H >= 2 and W >= 2, "ReflectionPad2d(1) requires H >= 2 and W >= 2"

    # XLU rotate path only when dims are native-tile aligned; otherwise use
    # the concat fallback (small shapes: everything fits in a few vregs).
    lane_roll = (W % 128 == 0)
    sub_roll = (W % 128 == 0) and (H % 8 == 0)

    img_spec = pl.BlockSpec((1, C, H, W), lambda b: (b, 0, 0, 0))
    out_spec = pl.BlockSpec((1, 8, 128), lambda b: (b, 0, 0))

    kernel = functools.partial(_masked_l1_ssim_kernel,
                               lane_roll=lane_roll, sub_roll=sub_roll)

    l1_t, ssim_t = pl.pallas_call(
        kernel,
        out_shape=(jax.ShapeDtypeStruct((B, 8, 128), jnp.float32),
                   jax.ShapeDtypeStruct((B, 8, 128), jnp.float32)),
        grid_spec=pltpu.PrefetchScalarGridSpec(
            num_scalar_prefetch=0,
            grid=(B,),
            in_specs=[img_spec, img_spec, img_spec],
            out_specs=(out_spec, out_spec),
        ),
        compiler_params=pltpu.CompilerParams(
            dimension_semantics=("parallel",),
            vmem_limit_bytes=_vmem_limit_bytes()),
    )(output, target, mask)

    l1_b = l1_t[:, 0, 0]      # per-sample masked L1
    ssim_b = ssim_t[:, 0, 0]  # per-sample masked SSIM
    f = ssim_factor
    loss = jnp.mean(l1_b * (1.0 - f) + ssim_b * f)
    return loss, jnp.mean(l1_b), jnp.mean(ssim_b)


# ---------------- pure-JAX reference (for correctness check only) ------------
def _reference(output, target, mask, ssim_factor=0.85):
    def refl(x):
        return jnp.pad(x, ((0, 0), (0, 0), (1, 1), (1, 1)), mode="reflect")

    def avgpool3(x):
        return lax.reduce_window(x, 0.0, lax.add, (1, 1, 3, 3),
                                 (1, 1, 1, 1), "VALID") / 9.0

    x = refl(output)
    y = refl(target)
    mu_x = avgpool3(x)
    mu_y = avgpool3(y)
    sigma_x = avgpool3(x * x) - mu_x ** 2
    sigma_y = avgpool3(y * y) - mu_y ** 2
    sigma_xy = avgpool3(x * y) - mu_x * mu_y
    n = (2 * mu_x * mu_y + _C1) * (2 * sigma_xy + _C2)
    d = (mu_x ** 2 + mu_y ** 2 + _C1) * (sigma_x + sigma_y + _C2)
    ssim_map = jnp.clip((1 - n / d) / 2, 0.0, 1.0)

    l1 = jnp.abs(output - target) * mask
    ssim = ssim_map * mask
    numel = jnp.sum(mask, axis=(1, 2, 3)) + 1e-7
    l1 = jnp.sum(l1, axis=(1, 2, 3)) / numel
    ssim = jnp.sum(ssim, axis=(1, 2, 3)) / numel
    f = ssim_factor
    return (jnp.mean(l1 * (1 - f) + ssim * f), jnp.mean(l1), jnp.mean(ssim))


def _check(shape, key):
    k1, k2, k3 = jax.random.split(key, 3)
    output = jax.random.normal(k1, shape, dtype=jnp.float32)
    target = jax.random.normal(k2, shape, dtype=jnp.float32)
    mask = (jax.random.uniform(k3, shape) > 0.3).astype(jnp.float32)

    got = masked_l1_ssim_loss(output, target, mask)
    jax.block_until_ready(got)
    want = _reference(output, target, mask)
    for g, w in zip(got, want):
        np.testing.assert_allclose(np.asarray(g), np.asarray(w),
                                   rtol=1e-5, atol=1e-5)


if __name__ == "__main__":
    key = jax.random.PRNGKey(0)
    k_small, k_aligned = jax.random.split(key, 2)

    # Small shape from the module spec (exercises the concat fallback path).
    _check((2, 4, 16, 16), k_small)
    # Lane/sublane-aligned shape (exercises the pltpu.roll fast path).
    _check((2, 3, 16, 256), k_aligned)

    print("KERNEL_OK")
</pallas_src>

<mosaic_0001>
module attributes {stable_mosaic.version = 11 : i64} {
  func.func @_masked_l1_ssim_kernel(%arg0: i32, %arg1: memref<1x4x16x16xf32, #tpu.memory_space<vmem>>, %arg2: memref<1x4x16x16xf32, #tpu.memory_space<vmem>>, %arg3: memref<1x4x16x16xf32, #tpu.memory_space<vmem>>, %arg4: memref<1x8x128xf32, #tpu.memory_space<vmem>>, %arg5: memref<1x8x128xf32, #tpu.memory_space<vmem>>) attributes {dimension_semantics = [#tpu.dimension_semantics<parallel>], iteration_bounds = array<i64: 2>, scalar_prefetch = 0 : i64, scratch_operands = 0 : i64, tpu.core_type = #tpu.core_type<tc>, window_params = [{transform_indices = @transform_0, window_bounds = array<i64: 1, 4, 16, 16>}, {transform_indices = @transform_1, window_bounds = array<i64: 1, 4, 16, 16>}, {transform_indices = @transform_2, window_bounds = array<i64: 1, 4, 16, 16>}, {transform_indices = @transform_3, window_bounds = array<i64: 1, 8, 128>}, {transform_indices = @transform_4, window_bounds = array<i64: 1, 8, 128>}]} {
    %c0 = arith.constant 0 : index
    %c0_0 = arith.constant 0 : index
    %c0_1 = arith.constant 0 : index
    %c0_2 = arith.constant 0 : index
    %0 = vector.load %arg1[%c0, %c0_0, %c0_1, %c0_2] : memref<1x4x16x16xf32, #tpu.memory_space<vmem>>, vector<1x4x16x16xf32>
    %1 = vector.shape_cast %0 : vector<1x4x16x16xf32> to vector<4x16x16xf32>
    %c0_3 = arith.constant 0 : index
    %c0_4 = arith.constant 0 : index
    %c0_5 = arith.constant 0 : index
    %c0_6 = arith.constant 0 : index
    %2 = vector.load %arg2[%c0_3, %c0_4, %c0_5, %c0_6] : memref<1x4x16x16xf32, #tpu.memory_space<vmem>>, vector<1x4x16x16xf32>
    %3 = vector.shape_cast %2 : vector<1x4x16x16xf32> to vector<4x16x16xf32>
    %c0_7 = arith.constant 0 : index
    %c0_8 = arith.constant 0 : index
    %c0_9 = arith.constant 0 : index
    %c0_10 = arith.constant 0 : index
    %4 = vector.load %arg3[%c0_7, %c0_8, %c0_9, %c0_10] : memref<1x4x16x16xf32, #tpu.memory_space<vmem>>, vector<1x4x16x16xf32>
    %5 = vector.shape_cast %4 : vector<1x4x16x16xf32> to vector<4x16x16xf32>
    %6 = arith.mulf %1, %1 : vector<4x16x16xf32>
    %7 = arith.mulf %3, %3 : vector<4x16x16xf32>
    %8 = arith.mulf %1, %3 : vector<4x16x16xf32>
    %9 = vector.extract_strided_slice %1 {offsets = [0, 0, 1], sizes = [4, 16, 1], strides = [1, 1, 1]} : vector<4x16x16xf32> to vector<4x16x1xf32>
    %10 = vector.extract_strided_slice %1 {offsets = [0, 0, 0], sizes = [4, 16, 15], strides = [1, 1, 1]} : vector<4x16x16xf32> to vector<4x16x15xf32>
    %11 = tpu.concatenate %9, %10 in 2 : vector<4x16x1xf32>, vector<4x16x15xf32> -> vector<4x16x16xf32>
    %12 = vector.extract_strided_slice %1 {offsets = [0, 0, 1], sizes = [4, 16, 15], strides = [1, 1, 1]} : vector<4x16x16xf32> to vector<4x16x15xf32>
    %13 = vector.extract_strided_slice %1 {offsets = [0, 0, 14], sizes = [4, 16, 1], strides = [1, 1, 1]} : vector<4x16x16xf32> to vector<4x16x1xf32>
    %14 = tpu.concatenate %12, %13 in 2 : vector<4x16x15xf32>, vector<4x16x1xf32> -> vector<4x16x16xf32>
    %15 = arith.addf %11, %1 : vector<4x16x16xf32>
    %16 = arith.addf %15, %14 : vector<4x16x16xf32>
    %17 = vector.extract_strided_slice %16 {offsets = [0, 1, 0], sizes = [4, 1, 16], strides = [1, 1, 1]} : vector<4x16x16xf32> to vector<4x1x16xf32>
    %18 = vector.extract_strided_slice %16 {offsets = [0, 0, 0], sizes = [4, 15, 16], strides = [1, 1, 1]} : vector<4x16x16xf32> to vector<4x15x16xf32>
    %19 = tpu.concatenate %17, %18 in 1 : vector<4x1x16xf32>, vector<4x15x16xf32> -> vector<4x16x16xf32>
    %20 = vector.extract_strided_slice %16 {offsets = [0, 1, 0], sizes = [4, 15, 16], strides = [1, 1, 1]} : vector<4x16x16xf32> to vector<4x15x16xf32>
    %21 = vector.extract_strided_slice %16 {offsets = [0, 14, 0], sizes = [4, 1, 16], strides = [1, 1, 1]} : vector<4x16x16xf32> to vector<4x1x16xf32>
    %22 = tpu.concatenate %20, %21 in 1 : vector<4x15x16xf32>, vector<4x1x16xf32> -> vector<4x16x16xf32>
    %23 = arith.addf %19, %16 : vector<4x16x16xf32>
    %24 = arith.addf %23, %22 : vector<4x16x16xf32>
    %25 = vector.extract_strided_slice %3 {offsets = [0, 0, 1], sizes = [4, 16, 1], strides = [1, 1, 1]} : vector<4x16x16xf32> to vector<4x16x1xf32>
    %26 = vector.extract_strided_slice %3 {offsets = [0, 0, 0], sizes = [4, 16, 15], strides = [1, 1, 1]} : vector<4x16x16xf32> to vector<4x16x15xf32>
    %27 = tpu.concatenate %25, %26 in 2 : vector<4x16x1xf32>, vector<4x16x15xf32> -> vector<4x16x16xf32>
    %28 = vector.extract_strided_slice %3 {offsets = [0, 0, 1], sizes = [4, 16, 15], strides = [1, 1, 1]} : vector<4x16x16xf32> to vector<4x16x15xf32>
    %29 = vector.extract_strided_slice %3 {offsets = [0, 0, 14], sizes = [4, 16, 1], strides = [1, 1, 1]} : vector<4x16x16xf32> to vector<4x16x1xf32>
    %30 = tpu.concatenate %28, %29 in 2 : vector<4x16x15xf32>, vector<4x16x1xf32> -> vector<4x16x16xf32>
    %31 = arith.addf %27, %3 : vector<4x16x16xf32>
    %32 = arith.addf %31, %30 : vector<4x16x16xf32>
    %33 = vector.extract_strided_slice %32 {offsets = [0, 1, 0], sizes = [4, 1, 16], strides = [1, 1, 1]} : vector<4x16x16xf32> to vector<4x1x16xf32>
    %34 = vector.extract_strided_slice %32 {offsets = [0, 0, 0], sizes = [4, 15, 16], strides = [1, 1, 1]} : vector<4x16x16xf32> to vector<4x15x16xf32>
    %35 = tpu.concatenate %33, %34 in 1 : vector<4x1x16xf32>, vector<4x15x16xf32> -> vector<4x16x16xf32>
    %36 = vector.extract_strided_slice %32 {offsets = [0, 1, 0], sizes = [4, 15, 16], strides = [1, 1, 1]} : vector<4x16x16xf32> to vector<4x15x16xf32>
    %37 = vector.extract_strided_slice %32 {offsets = [0, 14, 0], sizes = [4, 1, 16], strides = [1, 1, 1]} : vector<4x16x16xf32> to vector<4x1x16xf32>
    %38 = tpu.concatenate %36, %37 in 1 : vector<4x15x16xf32>, vector<4x1x16xf32> -> vector<4x16x16xf32>
    %39 = arith.addf %35, %32 : vector<4x16x16xf32>
    %40 = arith.addf %39, %38 : vector<4x16x16xf32>
    %41 = vector.extract_strided_slice %6 {offsets = [0, 0, 1], sizes = [4, 16, 1], strides = [1, 1, 1]} : vector<4x16x16xf32> to vector<4x16x1xf32>
    %42 = vector.extract_strided_slice %6 {offsets = [0, 0, 0], sizes = [4, 16, 15], strides = [1, 1, 1]} : vector<4x16x16xf32> to vector<4x16x15xf32>
    %43 = tpu.concatenate %41, %42 in 2 : vector<4x16x1xf32>, vector<4x16x15xf32> -> vector<4x16x16xf32>
    %44 = vector.extract_strided_slice %6 {offsets = [0, 0, 1], sizes = [4, 16, 15], strides = [1, 1, 1]} : vector<4x16x16xf32> to vector<4x16x15xf32>
    %45 = vector.extract_strided_slice %6 {offsets = [0, 0, 14], sizes = [4, 16, 1], strides = [1, 1, 1]} : vector<4x16x16xf32> to vector<4x16x1xf32>
    %46 = tpu.concatenate %44, %45 in 2 : vector<4x16x15xf32>, vector<4x16x1xf32> -> vector<4x16x16xf32>
    %47 = arith.addf %43, %6 : vector<4x16x16xf32>
    %48 = arith.addf %47, %46 : vector<4x16x16xf32>
    %49 = vector.extract_strided_slice %48 {offsets = [0, 1, 0], sizes = [4, 1, 16], strides = [1, 1, 1]} : vector<4x16x16xf32> to vector<4x1x16xf32>
    %50 = vector.extract_strided_slice %48 {offsets = [0, 0, 0], sizes = [4, 15, 16], strides = [1, 1, 1]} : vector<4x16x16xf32> to vector<4x15x16xf32>
    %51 = tpu.concatenate %49, %50 in 1 : vector<4x1x16xf32>, vector<4x15x16xf32> -> vector<4x16x16xf32>
    %52 = vector.extract_strided_slice %48 {offsets = [0, 1, 0], sizes = [4, 15, 16], strides = [1, 1, 1]} : vector<4x16x16xf32> to vector<4x15x16xf32>
    %53 = vector.extract_strided_slice %48 {offsets = [0, 14, 0], sizes = [4, 1, 16], strides = [1, 1, 1]} : vector<4x16x16xf32> to vector<4x1x16xf32>
    %54 = tpu.concatenate %52, %53 in 1 : vector<4x15x16xf32>, vector<4x1x16xf32> -> vector<4x16x16xf32>
    %55 = arith.addf %51, %48 : vector<4x16x16xf32>
    %56 = arith.addf %55, %54 : vector<4x16x16xf32>
    %57 = vector.extract_strided_slice %7 {offsets = [0, 0, 1], sizes = [4, 16, 1], strides = [1, 1, 1]} : vector<4x16x16xf32> to vector<4x16x1xf32>
    %58 = vector.extract_strided_slice %7 {offsets = [0, 0, 0], sizes = [4, 16, 15], strides = [1, 1, 1]} : vector<4x16x16xf32> to vector<4x16x15xf32>
    %59 = tpu.concatenate %57, %58 in 2 : vector<4x16x1xf32>, vector<4x16x15xf32> -> vector<4x16x16xf32>
    %60 = vector.extract_strided_slice %7 {offsets = [0, 0, 1], sizes = [4, 16, 15], strides = [1, 1, 1]} : vector<4x16x16xf32> to vector<4x16x15xf32>
    %61 = vector.extract_strided_slice %7 {offsets = [0, 0, 14], sizes = [4, 16, 1], strides = [1, 1, 1]} : vector<4x16x16xf32> to vector<4x16x1xf32>
    %62 = tpu.concatenate %60, %61 in 2 : vector<4x16x15xf32>, vector<4x16x1xf32> -> vector<4x16x16xf32>
    %63 = arith.addf %59, %7 : vector<4x16x16xf32>
    %64 = arith.addf %63, %62 : vector<4x16x16xf32>
    %65 = vector.extract_strided_slice %64 {offsets = [0, 1, 0], sizes = [4, 1, 16], strides = [1, 1, 1]} : vector<4x16x16xf32> to vector<4x1x16xf32>
    %66 = vector.extract_strided_slice %64 {offsets = [0, 0, 0], sizes = [4, 15, 16], strides = [1, 1, 1]} : vector<4x16x16xf32> to vector<4x15x16xf32>
    %67 = tpu.concatenate %65, %66 in 1 : vector<4x1x16xf32>, vector<4x15x16xf32> -> vector<4x16x16xf32>
    %68 = vector.extract_strided_slice %64 {offsets = [0, 1, 0], sizes = [4, 15, 16], strides = [1, 1, 1]} : vector<4x16x16xf32> to vector<4x15x16xf32>
    %69 = vector.extract_strided_slice %64 {offsets = [0, 14, 0], sizes = [4, 1, 16], strides = [1, 1, 1]} : vector<4x16x16xf32> to vector<4x1x16xf32>
    %70 = tpu.concatenate %68, %69 in 1 : vector<4x15x16xf32>, vector<4x1x16xf32> -> vector<4x16x16xf32>
    %71 = arith.addf %67, %64 : vector<4x16x16xf32>
    %72 = arith.addf %71, %70 : vector<4x16x16xf32>
    %73 = vector.extract_strided_slice %8 {offsets = [0, 0, 1], sizes = [4, 16, 1], strides = [1, 1, 1]} : vector<4x16x16xf32> to vector<4x16x1xf32>
    %74 = vector.extract_strided_slice %8 {offsets = [0, 0, 0], sizes = [4, 16, 15], strides = [1, 1, 1]} : vector<4x16x16xf32> to vector<4x16x15xf32>
    %75 = tpu.concatenate %73, %74 in 2 : vector<4x16x1xf32>, vector<4x16x15xf32> -> vector<4x16x16xf32>
    %76 = vector.extract_strided_slice %8 {offsets = [0, 0, 1], sizes = [4, 16, 15], strides = [1, 1, 1]} : vector<4x16x16xf32> to vector<4x16x15xf32>
    %77 = vector.extract_strided_slice %8 {offsets = [0, 0, 14], sizes = [4, 16, 1], strides = [1, 1, 1]} : vector<4x16x16xf32> to vector<4x16x1xf32>
    %78 = tpu.concatenate %76, %77 in 2 : vector<4x16x15xf32>, vector<4x16x1xf32> -> vector<4x16x16xf32>
    %79 = arith.addf %75, %8 : vector<4x16x16xf32>
    %80 = arith.addf %79, %78 : vector<4x16x16xf32>
    %81 = vector.extract_strided_slice %80 {offsets = [0, 1, 0], sizes = [4, 1, 16], strides = [1, 1, 1]} : vector<4x16x16xf32> to vector<4x1x16xf32>
    %82 = vector.extract_strided_slice %80 {offsets = [0, 0, 0], sizes = [4, 15, 16], strides = [1, 1, 1]} : vector<4x16x16xf32> to vector<4x15x16xf32>
    %83 = tpu.concatenate %81, %82 in 1 : vector<4x1x16xf32>, vector<4x15x16xf32> -> vector<4x16x16xf32>
    %84 = vector.extract_strided_slice %80 {offsets = [0, 1, 0], sizes = [4, 15, 16], strides = [1, 1, 1]} : vector<4x16x16xf32> to vector<4x15x16xf32>
    %85 = vector.extract_strided_slice %80 {offsets = [0, 14, 0], sizes = [4, 1, 16], strides = [1, 1, 1]} : vector<4x16x16xf32> to vector<4x1x16xf32>
    %86 = tpu.concatenate %84, %85 in 1 : vector<4x15x16xf32>, vector<4x1x16xf32> -> vector<4x16x16xf32>
    %87 = arith.addf %83, %80 : vector<4x16x16xf32>
    %88 = arith.addf %87, %86 : vector<4x16x16xf32>
    %89 = arith.mulf %24, %40 : vector<4x16x16xf32>
    %90 = arith.mulf %24, %24 : vector<4x16x16xf32>
    %91 = arith.mulf %40, %40 : vector<4x16x16xf32>
    %92 = arith.addf %89, %89 : vector<4x16x16xf32>
    %93 = arith.addf %90, %91 : vector<4x16x16xf32>
    %cst = arith.constant 8.100000e-03 : f32
    %94 = vector.broadcast %cst : f32 to vector<4x16x16xf32>
    %95 = arith.addf %92, %94 : vector<4x16x16xf32>
    %cst_11 = arith.constant 1.800000e+01 : f32
    %96 = vector.broadcast %cst_11 : f32 to vector<4x16x16xf32>
    %97 = arith.mulf %96, %88 : vector<4x16x16xf32>
    %98 = arith.subf %97, %92 : vector<4x16x16xf32>
    %cst_12 = arith.constant 7.290000e-02 : f32
    %99 = vector.broadcast %cst_12 : f32 to vector<4x16x16xf32>
    %100 = arith.addf %98, %99 : vector<4x16x16xf32>
    %101 = arith.mulf %95, %100 : vector<4x16x16xf32>
    %cst_13 = arith.constant 8.100000e-03 : f32
    %102 = vector.broadcast %cst_13 : f32 to vector<4x16x16xf32>
    %103 = arith.addf %93, %102 : vector<4x16x16xf32>
    %104 = arith.addf %56, %72 : vector<4x16x16xf32>
    %cst_14 = arith.constant 9.000000e+00 : f32
    %105 = vector.broadcast %cst_14 : f32 to vector<4x16x16xf32>
    %106 = arith.mulf %105, %104 : vector<4x16x16xf32>
    %107 = arith.subf %106, %93 : vector<4x16x16xf32>
    %cst_15 = arith.constant 7.290000e-02 : f32
    %108 = vector.broadcast %cst_15 : f32 to vector<4x16x16xf32>
    %109 = arith.addf %107, %108 : vector<4x16x16xf32>
    %110 = arith.mulf %103, %109 : vector<4x16x16xf32>
    %111 = tpu.reciprocal %110 {approx = true} : vector<4x16x16xf32> -> vector<4x16x16xf32>
    %112 = arith.mulf %110, %111 : vector<4x16x16xf32>
    %cst_16 = arith.constant 2.000000e+00 : f32
    %113 = vector.broadcast %cst_16 : f32 to vector<4x16x16xf32>
    %114 = arith.subf %113, %112 : vector<4x16x16xf32>
    %115 = arith.mulf %111, %114 : vector<4x16x16xf32>
    %116 = arith.mulf %101, %115 : vector<4x16x16xf32>
    %cst_17 = arith.constant 1.000000e+00 : f32
    %117 = vector.broadcast %cst_17 : f32 to vector<4x16x16xf32>
    %118 = arith.subf %117, %116 : vector<4x16x16xf32>
    %cst_18 = arith.constant 5.000000e-01 : f32
    %119 = vector.broadcast %cst_18 : f32 to vector<4x16x16xf32>
    %120 = arith.mulf %118, %119 : vector<4x16x16xf32>
    %cst_19 = arith.constant 0.000000e+00 : f32
    %cst_20 = arith.constant 1.000000e+00 : f32
    %121 = vector.broadcast %cst_19 : f32 to vector<4x16x16xf32>
    %122 = arith.maximumf %121, %120 : vector<4x16x16xf32>
    %123 = vector.broadcast %cst_20 : f32 to vector<4x16x16xf32>
    %124 = arith.minimumf %123, %122 : vector<4x16x16xf32>
    %125 = arith.subf %1, %3 : vector<4x16x16xf32>
    %126 = math.absf %125 : vector<4x16x16xf32>
    %127 = arith.mulf %126, %5 : vector<4x16x16xf32>
    %128 = vector.shape_cast %127 : vector<4x16x16xf32> to vector<1x4x16x16xf32>
    %cst_21 = arith.constant dense<0.000000e+00> : vector<1xf32>
    %129 = vector.multi_reduction <add>, %128, %cst_21 [1, 2, 3] : vector<1x4x16x16xf32> to vector<1xf32>
    %130 = vector.shape_cast %129 : vector<1xf32> to vector<1x1x1x1xf32>
    %131 = vector.extract %130[0, 0, 0, 0] : f32 from vector<1x1x1x1xf32>
    %132 = arith.mulf %124, %5 : vector<4x16x16xf32>
    %133 = vector.shape_cast %132 : vector<4x16x16xf32> to vector<1x4x16x16xf32>
    %cst_22 = arith.constant dense<0.000000e+00> : vector<1xf32>
    %134 = vector.multi_reduction <add>, %133, %cst_22 [1, 2, 3] : vector<1x4x16x16xf32> to vector<1xf32>
    %135 = vector.shape_cast %134 : vector<1xf32> to vector<1x1x1x1xf32>
    %136 = vector.extract %135[0, 0, 0, 0] : f32 from vector<1x1x1x1xf32>
    %137 = vector.shape_cast %5 : vector<4x16x16xf32> to vector<1x4x16x16xf32>
    %cst_23 = arith.constant dense<0.000000e+00> : vector<1xf32>
    %138 = vector.multi_reduction <add>, %137, %cst_23 [1, 2, 3] : vector<1x4x16x16xf32> to vector<1xf32>
    %139 = vector.shape_cast %138 : vector<1xf32> to vector<1x1x1x1xf32>
    %140 = vector.extract %139[0, 0, 0, 0] : f32 from vector<1x1x1x1xf32>
    %cst_24 = arith.constant 1.000000e-07 : f32
    %141 = arith.addf %140, %cst_24 : f32
    %cst_25 = arith.constant 1.000000e+00 : f32
    %142 = arith.divf %cst_25, %141 : f32
    %143 = arith.mulf %131, %142 : f32
    %144 = vector.broadcast %143 : f32 to vector<1x8x128xf32>
    %c0_26 = arith.constant 0 : index
    %c0_27 = arith.constant 0 : index
    %c0_28 = arith.constant 0 : index
    %145 = vector.load %arg4[%c0_26, %c0_27, %c0_28] : memref<1x8x128xf32, #tpu.memory_space<vmem>>, vector<1x8x128xf32>
    tpu.vector_store %arg4[%c0_26, %c0_27, %c0_28], %144 {strides = array<i32>} : memref<1x8x128xf32, #tpu.memory_space<vmem>>, vector<1x8x128xf32>,
    %146 = arith.mulf %136, %142 : f32
    %147 = vector.broadcast %146 : f32 to vector<1x8x128xf32>
    %c0_29 = arith.constant 0 : index
    %c0_30 = arith.constant 0 : index
    %c0_31 = arith.constant 0 : index
    %148 = vector.load %arg5[%c0_29, %c0_30, %c0_31] : memref<1x8x128xf32, #tpu.memory_space<vmem>>, vector<1x8x128xf32>
    tpu.vector_store %arg5[%c0_29, %c0_30, %c0_31], %147 {strides = array<i32>} : memref<1x8x128xf32, #tpu.memory_space<vmem>>, vector<1x8x128xf32>,
    return
  }
  func.func @transform_0(%arg0: i32) -> (i32, i32, i32, i32) {
    %c0_i32 = arith.constant 0 : i32
    %c0_i32_0 = arith.constant 0 : i32
    %c0_i32_1 = arith.constant 0 : i32
    %c0_i32_2 = arith.constant 0 : i32
    return %arg0, %c0_i32, %c0_i32_0, %c0_i32_1 : i32, i32, i32, i32
  }
  func.func @transform_1(%arg0: i32) -> (i32, i32, i32, i32) {
    %c0_i32 = arith.constant 0 : i32
    %c0_i32_0 = arith.constant 0 : i32
    %c0_i32_1 = arith.constant 0 : i32
    %c0_i32_2 = arith.constant 0 : i32
    return %arg0, %c0_i32, %c0_i32_0, %c0_i32_1 : i32, i32, i32, i32
  }
  func.func @transform_2(%arg0: i32) -> (i32, i32, i32, i32) {
    %c0_i32 = arith.constant 0 : i32
    %c0_i32_0 = arith.constant 0 : i32
    %c0_i32_1 = arith.constant 0 : i32
    %c0_i32_2 = arith.constant 0 : i32
    return %arg0, %c0_i32, %c0_i32_0, %c0_i32_1 : i32, i32, i32, i32
  }
  func.func @transform_3(%arg0: i32) -> (i32, i32, i32) {
    %c0_i32 = arith.constant 0 : i32
    %c0_i32_0 = arith.constant 0 : i32
    %c0_i32_1 = arith.constant 0 : i32
    return %arg0, %c0_i32, %c0_i32_0 : i32, i32, i32
  }
  func.func @transform_4(%arg0: i32) -> (i32, i32, i32) {
    %c0_i32 = arith.constant 0 : i32
    %c0_i32_0 = arith.constant 0 : i32
    %c0_i32_1 = arith.constant 0 : i32
    return %arg0, %c0_i32, %c0_i32_0 : i32, i32, i32
  }
}

</mosaic_0001>

<bundles_post_ra>
// kernel: tpu_custom_call.1
= control target key start
LH: loop header
LB: loop body
LE: loop exit
PB: predicated region body
PF: predicated region fallthrough
CT: control target
= control target key end

     0   :  { %s3277_s0 = inlined_call_operand.hbm [shape: f32[2,4,16,16], index: 0, kind: input, shape index: {}]   ;;  %s3278_s1 = inlined_call_operand.hbm [shape: f32[2,4,16,16], index: 1, kind: input, shape index: {}]   ;;  %s3279_s2 = inlined_call_operand.hbm [shape: f32[2,4,16,16], index: 2, kind: input, shape index: {}]   ;;  %s3280_s3 = inlined_call_operand.hbm [shape: f32[2,8,128], index: 3, kind: output, shape index: {0}]   ;;  %s3281_s4 = inlined_call_operand.hbm [shape: f32[2,8,128], index: 4, kind: output, shape index: {1}]  }
   0x1   :  { %3308 = sst [smem:[#allocation28_spill]] %s3277_s0 }
   0x2   :  { %3309 = sst [smem:[#allocation29_spill]] %s3278_s1 }
   0x3   :  { %10 = vsyncpa [#allocation3], 0 }
   0x4   :  { %12 = vsyncpa [#allocation3 + $0x1], 0 }
   0x5   :  { %13 = vsyncpa [#allocation6], 0 }
   0x6   :  { %15 = vsyncpa [#allocation6 + $0x1], 0 }
   0x7   :  { %16 = vsyncpa [#allocation4], 0 }
   0x8   :  { %18 = vsyncpa [#allocation4 + $0x1], 0 }
   0x9   :  { %19 = vsyncpa [#allocation10], 0 }
   0xa   :  { %21 = vsyncpa [#allocation10 + $0x1], 0  ;;  %s2043_s15 = smov 0   ;;  %s2045_s16 = smov 0  }
   0xb   :  { %s2047_s17 = smov 0   ;;  %s2049_s18 = smov 0  }
   0xc LB: > { %s2064_s19 = sadd.s32 4294967295, %s2007_s18   ;;  %s1688_s20 = sadd.s32 4294967294, %s2007_s18   ;;  %s2007_s18 = sphi %s2049_s18, %s3366_s18   ;;  %s2003_s17 = sphi %s2047_s17, %s3365_s17   ;;  %s1999_s16 = sphi %s2045_s16, %s3364_s16   ;;  %s1995_s15 = sphi %s2043_s15, %s3363_s15  }
   0xd   : > { %s2068_s21 = sadd.s32 1, %s2007_s18   ;;  %s34_s22 = sadd.s32 1, %s2003_s17 }
   0xe   : > { %s31_s23 = ssub.s32 %s2007_s18, %s2068_s21  ;;  %p41_p0 = scmp.ne.s32.totalorder %s2003_s17, %s1999_s16 }
   0xf   : > { %p32_p1 = scmp.eq.s32.totalorder %s31_s23, 0  ;;  %p42_p2 = scmp.eq.s32.totalorder %s2007_s18, 0 }
  0x10   : > { %p47_p3 = scmp.ne.s32.totalorder %s1999_s16, %s1995_s15  ;;  %p48_p4 = scmp.eq.s32.totalorder %s2064_s19, 0 }
  0x11   : > { %s2080_s24 = scalar_select %p32_p1, %s2003_s17, %s34_s22  }
  0x12   : > { %p43_p5 = por %p42_p2, %p41_p0  ;;  %p2082_p6 = por %p48_p4, %p47_p3 }
  0x13   : > { %p123_p7 = scmp.eq.s32.totalorder %s2064_s19, 1  ;;  %p129_p8 = scmp.eq.s32.totalorder %s1688_s20, 1 }
  0x14   : > { %s3310_s25 = scalar_select %p2082_p6, 1, 0 }
  0x15   : > { %p1750_p10 = scmp.lt.s32.totalorder %s2007_s18, 2  ;;  %p2089_p11 = por %p123_p7, %p41_p0 }
  0x16   : > { %p2093_p12 = por %p129_p8, %p47_p3  ;;  %s175_s28 = sand.u32 1, %s2003_s17  }
  0x17   : > { %s3311_s26 = scalar_select %p2089_p11, 1, 0 }
  0x18   : > { %s3312_s27 = scalar_select %p2093_p12, 1, 0 }
  0x19   : > { %s2099_s29 = sshll.u32 %s2007_s18, 10  ;;  %s2103_s30 = sshll.u32 %s175_s28, 6 }
  0x1a   : > { %p2105_p13 = pnand %p1750_p10, %p43_p5  ;;  %s196_s6 = sand.u32 1, %s2007_s18  }
  0x1b   : > { %s3314_s1 = sld [smem:[#allocation29_spill]]  ;;  %s200_s10 = scalar_lea.vmem [#allocation5], %s2103_s30 }
  0x1c   : > { %s207_s11 = sshll.u32 %s200_s10, 4  ;;  %s2120_s12 = scalar_lea.sflag [#allocation6], %s196_s6  ;;  %s2117_s11 = int_to_ptr.vmem [resolvable:$true] %s207_s11 }
  0x1d   : > { %p2126_p2 = pneg %p2105_p13 }
  0x21   : > { %s2114_s9 = scalar_lea.hbm %s3314_s1, %s2099_s29  ;;  %s1820_s23 = scalar_lea.hbm %s3314_s1, 2048 }
  0x22   : > { %s1815_s13 = scalar_lea.hbm %s2114_s9, 1024  ;;  %p1821_p5 = scmp.lt.u32.totalorder %s2114_s9, %s3314_s1 }
  0x23   : > { %p1816_p1 = scmp.ne.s32.totalorder %s2114_s9, %s1815_s13  ;;  %p1822_p7 = scmp.lt.u32.totalorder %s1820_s23, %s1815_s13 }
  0x24   : > { %p1824_p10 = scmp.lt.u32.totalorder %s1815_s13, %s2114_s9 }
  0x25   : > { %p1818_p3 = pnand %p2126_p2, %p1816_p1  ;;  %p1823_p8 = por %p1822_p7, %p1821_p5 }
  0x27   : > { %p1819_p4 = pneg %p1818_p3  ;;  %p1825_p9 = por %p1824_p10, %p1823_p8 }
  0x29   : > { %p1826_p0 = pnand %p1825_p9, %p1819_p4 }
  0x2b   : > { %1829 = shalt.err (!%p1826_p0)
}
  0x2c   : > { %s1830_s6 = scalar_lea.vmem %s2117_s11, 1024  ;;  %s2009_s10 = smov [#allocation5]  }
  0x2d   : > { %p1831_p1 = scmp.ne.s32.totalorder %s2117_s11, %s1830_s6  ;;  %s1835_s20 = sshll.u32 %s2009_s10, 4  ;;  %s1836_s20 = int_to_ptr.vmem [resolvable:$false] %s1835_s20 }
  0x2e   : > { %s1837_s22 = scalar_lea.vmem %s1836_s20, 2048  ;;  %p1838_p11 = scmp.lt.s32.totalorder %s2117_s11, %s1836_s20 }
  0x2f   : > { %p1833_p3 = pnand %p1831_p1, %p2126_p2  ;;  %p1839_p6 = scmp.lt.s32.totalorder %s1837_s22, %s1830_s6 }
  0x31   : > { %p1834_p12 = pneg %p1833_p3  ;;  %p1840_p5 = por %p1839_p6, %p1838_p11 }
  0x33   : > { %p1841_p7 = pnand %p1840_p5, %p1834_p12 }
  0x35   : > { %1844 = shalt.err (!%p1841_p7)
}
  0x36   : > { %s3284_s13 = smov 128   ;;  %s3286_s23 = smov 8  }
  0x37   : > { %1739 = dma.hbm_to_vmem [thread:$0]  (!%p2105_p13), %s2114_s9, 1024, %s2117_s11, %s2120_s12, %s3284_s13, %s3284_s13, %s3286_s23  }
  0x38   : > { %p236_p6 = scmp.lt.s32.totalorder %s2007_s18, 3  ;;  %s3316_s0 = sld [smem:[#allocation28_spill]] }
  0x39   : > { %p3317_p9 = scmp.ge.s32.totalorder %s2007_s18, 1  ;;  %s179_s20 = scalar_lea.vmem [#allocation2], %s2103_s30 }
  0x3a   : > { %s186_s22 = sshll.u32 %s179_s20, 4  ;;  %s2171_s9 = scalar_lea.sflag [#allocation3], %s175_s28  ;;  %s2167_s22 = int_to_ptr.vmem [resolvable:$true] %s186_s22 }
  0x3b   : > { %p2162_p11 = pnand %p3317_p9, %p236_p6 }
  0x3d   : > { %s3318_s10 = scalar_select %p2162_p11, 1, 0 }
  0x3e   : > { %s2158_s6 = scalar_lea.hbm %s3316_s0, %s2099_s29  ;;  %s1850_s13 = scalar_lea.hbm %s3316_s0, 2048 }
  0x3f   : > { %s1845_s11 = scalar_lea.hbm %s2158_s6, 1024  ;;  %p1851_p8 = scmp.lt.u32.totalorder %s2158_s6, %s3316_s0 }
  0x40   : > { %p1846_p12 = scmp.ne.s32.totalorder %s2158_s6, %s1845_s11  ;;  %p1852_p10 = scmp.lt.u32.totalorder %s1850_s13, %s1845_s11 }
  0x41   : > { %p1854_p3 = scmp.lt.u32.totalorder %s1845_s11, %s2158_s6 }
  0x42   : > { %p1848_p0 = pnand %p1846_p12, %p2126_p2  ;;  %p1853_p1 = por %p1852_p10, %p1851_p8 }
  0x44   : > { %p1849_p4 = pneg %p1848_p0  ;;  %p1855_p5 = por %p1854_p3, %p1853_p1 }
  0x46   : > { %p1856_p7 = pnand %p1855_p5, %p1849_p4 }
  0x48   : > { %1859 = shalt.err (!%p1856_p7)
}
  0x49   : > { %s1860_s28 = scalar_lea.vmem %s2167_s22, 1024  ;;  %s2012_s20 = smov [#allocation2]  }
  0x4a   : > { %p1861_p6 = scmp.ne.s32.totalorder %s2167_s22, %s1860_s28  ;;  %s1865_s7 = sshll.u32 %s2012_s20, 4  ;;  %s1866_s7 = int_to_ptr.vmem [resolvable:$false] %s1865_s7 }
  0x4b   : > { %s1867_s1 = scalar_lea.vmem %s1866_s7, 2048  ;;  %p1868_p0 = scmp.lt.s32.totalorder %s2167_s22, %s1866_s7 }
  0x4c   : > { %p1863_p9 = pnand %p1861_p6, %p2126_p2  ;;  %p1869_p11 = scmp.lt.s32.totalorder %s1867_s1, %s1860_s28 }
  0x4e   : > { %p1864_p12 = pneg %p1863_p9  ;;  %p1870_p8 = por %p1869_p11, %p1868_p0 }
  0x50   : > { %p1871_p10 = pnand %p1870_p8, %p1864_p12 }
  0x52   : > { %1874 = shalt.err (!%p1871_p10)
}
  0x53   : > { %s3319_s13 = smov 8   ;;  %s3320_s23 = smov 128  }
  0x54   : > { %1736 = dma.hbm_to_vmem [thread:$0]  (!%p2105_p13), %s2158_s6, 1024, %s2167_s22, %s2171_s9, %s3320_s23, %s3320_s23, %s3319_s13  }
  0x55   : > { %s2202_s20 = scalar_lea.hbm %s3279_s2, %s2099_s29  ;;  %s221_s28 = scalar_lea.vmem [#allocation7], %s2103_s30 }
  0x56   : > { %s228_s7 = sshll.u32 %s221_s28, 4  ;;  %s1875_s1 = scalar_lea.hbm %s2202_s20, 1024  ;;  %s2205_s7 = int_to_ptr.vmem [resolvable:$true] %s228_s7 }
  0x57   : > { %p1876_p11 = scmp.ne.s32.totalorder %s2202_s20, %s1875_s1  ;;  %s1880_s22 = scalar_lea.hbm %s3279_s2, 2048 }
  0x58   : > { %p1881_p3 = scmp.lt.u32.totalorder %s2202_s20, %s3279_s2  ;;  %p1882_p5 = scmp.lt.u32.totalorder %s1880_s22, %s1875_s1 }
  0x59   : > { %p1878_p4 = pnand %p1876_p11, %p2126_p2  ;;  %p1884_p6 = scmp.lt.u32.totalorder %s1875_s1, %s2202_s20 }
  0x5a   : > { %p1883_p7 = por %p1882_p5, %p1881_p3 }
  0x5b   : > { %p1879_p1 = pneg %p1878_p4 }
  0x5c   : > { %p1885_p9 = por %p1884_p6, %p1883_p7 }
  0x5e   : > { %p1886_p12 = pnand %p1885_p9, %p1879_p1 }
  0x60   : > { %1889 = shalt.err (!%p1886_p12)
}
  0x61   : > { %s1890_s30 = scalar_lea.vmem %s2205_s7, 1024  ;;  %s2013_s0 = smov [#allocation7]  }
  0x62   : > { %p1891_p0 = scmp.ne.s32.totalorder %s2205_s7, %s1890_s30  ;;  %s1895_s11 = sshll.u32 %s2013_s0, 4  ;;  %s1896_s11 = int_to_ptr.vmem [resolvable:$false] %s1895_s11 }
  0x63   : > { %s1897_s8 = scalar_lea.vmem %s1896_s11, 2048  ;;  %p1898_p11 = scmp.lt.s32.totalorder %s2205_s7, %s1896_s11 }
  0x64   : > { %p1893_p8 = pnand %p1891_p0, %p2126_p2  ;;  %p1899_p4 = scmp.lt.s32.totalorder %s1897_s8, %s1890_s30 }
  0x66   : > { %p1894_p10 = pneg %p1893_p8  ;;  %p1900_p3 = por %p1899_p4, %p1898_p11 }
  0x68   : > { %p1901_p5 = pnand %p1900_p3, %p1894_p10 }
  0x6a   : > { %1904 = shalt.err (!%p1901_p5)
}
  0x6b   : > { %1742 = dma.hbm_to_vmem [thread:$0]  (!%p2105_p13), %s2202_s20, 1024, %s2205_s7, %s2120_s12, %s3320_s23, %s3320_s23, %s3319_s13  }
  0x6c   : > { %p3321_p2 = scmp.ne.s32.totalorder %s3318_s10, 0 }
  0x6e   : > { %240 = sbr.rel (%p3321_p2) target bundleno = 749 (0x2ed), region = 32 }
  0x75   : > { %s2235_s14 = sand.u32 1, %s1999_s16   ;;  %p3322_p1 = scmp.ne.s32.totalorder %s3310_s25, 0 }
  0x76   : > { %s2238_s28 = sshll.u32 %s2235_s14, 6  ;;  %s243_s5 = scalar_lea.sflag [#allocation3], %s2235_s14 }
  0x77   : > { %s2242_s1 = scalar_lea.vmem [#allocation2], %s2238_s28 }
  0x78   : > { %1978 = dma.done.wait (%p3322_p1), %s243_s5, 1024  }
  0x79   : > { %1980 = vsyncadd (%p3322_p1), %s243_s5, 4294966272  ;;  %s251_s12 = sand.u32 1, %s2064_s19   ;;  %s2250_s13 = scalar_lea.vmem [#allocation5], %s2238_s28 }
  0x7a   : > { %s252_s10 = scalar_lea.sflag [#allocation6], %s251_s12 }
  0x7b   : > { %1982 = dma.done.wait (%p3322_p1), %s252_s10, 2048  }
  0x7c   : > { %1984 = vsyncadd (%p3322_p1), %s252_s10, 4294965248  ;;  %v2257_v0 = vld [vmem:[%s2242_s1] sm:$0xff]  ;;  %s2014_s23 = smov 1   ;;  %s2015_s20 = smov 127   ;;  %v2264_v1 = vld [vmem:[%s2242_s1 + $0x8] sm:$0xff]  ;;  %vm408_vm0 = vcmask 7168  }
  0x7d   : > { %384 = vrot.lane.b32.xlu1 %v2257_v0, %s2014_s23  ;;  %360 = vrot.lane.b32.xlu0 %v2257_v0, %s2015_s20  ;;  %v2271_v2 = vld [vmem:[%s2250_s13 + $0x8] sm:$0xff]  ;;  %v2274_v3 = vld [vmem:[%s2250_s13] sm:$0xff]  ;;  %v2286_v4 = vmul.f32 %v2264_v1, %v2264_v1  ;;  %v2290_v5 = vmul.f32 %v2257_v0, %v2257_v0  ;;  %vm417_vm1 = vcmask 121856   ;;  %vm458_vm2 = vcmask 1040384   ;;  %s2725_s25 = scalar_lea.vmem [#allocation7], %s2238_s28  ;;  %s1704_s29 = sshll.u32 %s2235_s14, 3 }
  0x7e   : > { %v2302_v6 = vmul.f32 %v2271_v2, %v2271_v2  ;;  %v2306_v7 = vmul.f32 %v2274_v3, %v2274_v3  ;;  %v2317_v8 = vld [vmem:[%s2242_s1 + $0x10] sm:$0xff]  ;;  %v2347_v12 = vld [vmem:[%s2242_s1 + $0x18] sm:$0xff]  ;;  %v2377_v16 = vld [vmem:[%s2242_s1 + $0x20] sm:$0xff]  ;;  %vm483_vm3 = vcmask 1046528   ;;  %v2505_v51 = vmul.f32 %v2271_v2, %v2264_v1  ;;  %s1708_s30 = sshll.u32 %s2064_s19, 7  ;;  %s296_s0 = scalar_lea.vmem [#allocation8], %s1704_s29 }
  0x7f   : > { %v2324_v9 = vld [vmem:[%s2250_s13 + $0x10] sm:$0xff]  ;;  %v2332_v10 = vmul.f32 %v2317_v8, %v2317_v8  ;;  %v2354_v13 = vld [vmem:[%s2250_s13 + $0x18] sm:$0xff]  ;;  %v2362_v14 = vmul.f32 %v2347_v12, %v2347_v12  ;;  %v2384_v17 = vld [vmem:[%s2250_s13 + $0x20] sm:$0xff]  ;;  %v2392_v18 = vmul.f32 %v2377_v16, %v2377_v16  ;;  %v2509_v52 = vmul.f32 %v2274_v3, %v2257_v0  ;;  %s1530_s11 = sshll.u32 %s296_s0, 4  ;;  %s3204_s5 = scalar_lea.hbm %s3280_s3, %s1708_s30  ;;  %s3206_s11 = int_to_ptr.vmem [resolvable:$true] %s1530_s11 }
  0x80   : > { %v2340_v11 = vmul.f32 %v2324_v9, %v2324_v9  ;;  %v2370_v15 = vmul.f32 %v2354_v13, %v2354_v13  ;;  %v2400_v19 = vmul.f32 %v2384_v17, %v2384_v17  ;;  %v2407_v20 = vld [vmem:[%s2242_s1 + $0x28] sm:$0xff]  ;;  %v2437_v24 = vld [vmem:[%s2242_s1 + $0x30] sm:$0xff]  ;;  %v2467_v28 = vld [vmem:[%s2242_s1 + $0x38] sm:$0xff]  ;;  %3323 = vst [vmem:[#allocation15_spill] sm:$0xff] %v2505_v51  ;;  %vm1420_vm4 = vcmask 130048   ;;  %s303_s12 = scalar_lea.vmem [#allocation9], %s1704_s29 }
  0x81   : > { %386 = vrot.lane.b32.xlu1 %v2264_v1, %s2014_s23  ;;  %362 = vrot.lane.b32.xlu0 %v2264_v1, %s2015_s20  ;;  %v2414_v21 = vld [vmem:[%s2250_s13 + $0x28] sm:$0xff]  ;;  %v2422_v22 = vmul.f32 %v2407_v20, %v2407_v20  ;;  %v2444_v25 = vld [vmem:[%s2250_s13 + $0x30] sm:$0xff]  ;;  %v2452_v26 = vmul.f32 %v2437_v24, %v2437_v24  ;;  %v2485_v35 = vmul.f32 %v2467_v28, %v2467_v28  ;;  %s1543_s10 = sshll.u32 %s303_s12, 4  ;;  %p3360_p7 = scmp.ne.s32.totalorder %s3311_s26, 0  ;;  %s3213_s10 = int_to_ptr.vmem [resolvable:$true] %s1543_s10 }
  0x82   : > { %v2430_v23 = vmul.f32 %v2414_v21, %v2414_v21  ;;  %v2460_v27 = vmul.f32 %v2444_v25, %v2444_v25  ;;  %v2474_v29 = vld [vmem:[%s2250_s13 + $0x38] sm:$0xff]  ;;  %3324 = vst [vmem:[#allocation16_spill] sm:$0xff] %v2509_v52 }
  0x83   : > { %v2496_v44 = vmul.f32 %v2474_v29, %v2474_v29 }
  0x85   : > { %534 = vrot.lane.b32.xlu1 %v2271_v2, %s2015_s20  ;;  %532 = vrot.lane.b32.xlu0 %v2274_v3, %s2015_s20 }
  0x89   : > { %558 = vrot.lane.b32.xlu1 %v2271_v2, %s2014_s23  ;;  %556 = vrot.lane.b32.xlu0 %v2274_v3, %s2014_s23 }
  0x8d   : > { %702 = vrot.lane.b32.xlu1 %v2286_v4, %s2015_s20  ;;  %700 = vrot.lane.b32.xlu0 %v2290_v5, %s2015_s20 }
  0x91   : > { %726 = vrot.lane.b32.xlu1 %v2286_v4, %s2014_s23  ;;  %724 = vrot.lane.b32.xlu0 %v2290_v5, %s2014_s23 }
  0x95   : > { %870 = vrot.lane.b32.xlu1 %v2302_v6, %s2015_s20  ;;  %868 = vrot.lane.b32.xlu0 %v2306_v7, %s2015_s20 }
  0x99   : > { %894 = vrot.lane.b32.xlu1 %v2302_v6, %s2014_s23  ;;  %892 = vrot.lane.b32.xlu0 %v2306_v7, %s2014_s23 }
  0x9d   : > { %388 = vrot.lane.b32.xlu1 %v2317_v8, %s2014_s23  ;;  %364 = vrot.lane.b32.xlu0 %v2317_v8, %s2015_s20 }
  0xa1   : > { %560 = vrot.lane.b32.xlu1 %v2324_v9, %s2014_s23  ;;  %536 = vrot.lane.b32.xlu0 %v2324_v9, %s2015_s20 }
  0xa5   : > { %728 = vrot.lane.b32.xlu1 %v2332_v10, %s2014_s23  ;;  %704 = vrot.lane.b32.xlu0 %v2332_v10, %s2015_s20 }
  0xa9   : > { %896 = vrot.lane.b32.xlu1 %v2340_v11, %s2014_s23  ;;  %872 = vrot.lane.b32.xlu0 %v2340_v11, %s2015_s20 }
  0xad   : > { %390 = vrot.lane.b32.xlu1 %v2347_v12, %s2014_s23  ;;  %366 = vrot.lane.b32.xlu0 %v2347_v12, %s2015_s20 }
  0xb1   : > { %562 = vrot.lane.b32.xlu1 %v2354_v13, %s2014_s23  ;;  %538 = vrot.lane.b32.xlu0 %v2354_v13, %s2015_s20 }
  0xb5   : > { %730 = vrot.lane.b32.xlu1 %v2362_v14, %s2014_s23  ;;  %706 = vrot.lane.b32.xlu0 %v2362_v14, %s2015_s20 }
  0xb9   : > { %898 = vrot.lane.b32.xlu1 %v2370_v15, %s2014_s23  ;;  %874 = vrot.lane.b32.xlu0 %v2370_v15, %s2015_s20 }
  0xbd   : > { %392 = vrot.lane.b32.xlu1 %v2377_v16, %s2014_s23  ;;  %368 = vrot.lane.b32.xlu0 %v2377_v16, %s2015_s20 }
  0xc1   : > { %564 = vrot.lane.b32.xlu1 %v2384_v17, %s2014_s23  ;;  %540 = vrot.lane.b32.xlu0 %v2384_v17, %s2015_s20 }
  0xc5   : > { %732 = vrot.lane.b32.xlu1 %v2392_v18, %s2014_s23  ;;  %708 = vrot.lane.b32.xlu0 %v2392_v18, %s2015_s20 }
  0xc9   : > { %900 = vrot.lane.b32.xlu1 %v2400_v19, %s2014_s23  ;;  %876 = vrot.lane.b32.xlu0 %v2400_v19, %s2015_s20 }
  0xcd   : > { %394 = vrot.lane.b32.xlu1 %v2407_v20, %s2014_s23  ;;  %370 = vrot.lane.b32.xlu0 %v2407_v20, %s2015_s20 }
  0xd1   : > { %566 = vrot.lane.b32.xlu1 %v2414_v21, %s2014_s23  ;;  %542 = vrot.lane.b32.xlu0 %v2414_v21, %s2015_s20 }
  0xd5   : > { %734 = vrot.lane.b32.xlu1 %v2422_v22, %s2014_s23  ;;  %710 = vrot.lane.b32.xlu0 %v2422_v22, %s2015_s20 }
  0xd9   : > { %902 = vrot.lane.b32.xlu1 %v2430_v23, %s2014_s23  ;;  %878 = vrot.lane.b32.xlu0 %v2430_v23, %s2015_s20 }
  0xdd   : > { %396 = vrot.lane.b32.xlu1 %v2437_v24, %s2014_s23  ;;  %372 = vrot.lane.b32.xlu0 %v2437_v24, %s2015_s20 }
  0xe1   : > { %568 = vrot.lane.b32.xlu1 %v2444_v25, %s2014_s23  ;;  %544 = vrot.lane.b32.xlu0 %v2444_v25, %s2015_s20 }
  0xe5   : > { %736 = vrot.lane.b32.xlu1 %v2452_v26, %s2014_s23  ;;  %712 = vrot.lane.b32.xlu0 %v2452_v26, %s2015_s20 }
  0xe9   : > { %904 = vrot.lane.b32.xlu1 %v2460_v27, %s2014_s23  ;;  %880 = vrot.lane.b32.xlu0 %v2460_v27, %s2015_s20 }
  0xed   : > { %398 = vrot.lane.b32.xlu1 %v2467_v28, %s2014_s23  ;;  %374 = vrot.lane.b32.xlu0 %v2467_v28, %s2015_s20 }
  0xef   : > { %v385_v30 = vpop.permute.xlu1 %384  ;;  %v361_v31 = vpop.permute.xlu0 %360 }
  0xf0   : > { %v409_v32 = vsel %vm408_vm0, %v361_v31, %v385_v30  ;;  %v418_v33 = vsel %vm417_vm1, %v361_v31, %v385_v30 }
  0xf1   : > { %v426_v34 = vadd.f32 %v409_v32, %v2257_v0  ;;  %570 = vrot.lane.b32.xlu1 %v2474_v29, %s2014_s23  ;;  %546 = vrot.lane.b32.xlu0 %v2474_v29, %s2015_s20 }
  0xf3   : > { %v434_v36 = vadd.f32 %v426_v34, %v418_v33  ;;  %v387_v37 = vpop.permute.xlu1 %386  ;;  %v363_v38 = vpop.permute.xlu0 %362 }
  0xf4   : > { %v410_v39 = vsel %vm408_vm0, %v363_v38, %v387_v37  ;;  %v419_v40 = vsel %vm417_vm1, %v363_v38, %v387_v37 }
  0xf5   : > { %v446_v41 = vrot.slane %v434_v36, 1  ;;  %v459_v42 = vrot.slane %v434_v36, 7  ;;  %v427_v43 = vadd.f32 %v410_v39, %v2264_v1  ;;  %738 = vrot.lane.b32.xlu1 %v2485_v35, %s2014_s23  ;;  %714 = vrot.lane.b32.xlu0 %v2485_v35, %s2015_s20 }
  0xf7   : > { %v479_v45 = vsel %vm458_vm2, %v446_v41, %v459_v42  ;;  %v435_v46 = vadd.f32 %v427_v43, %v419_v40  ;;  %v535_v47 = vpop.permute.xlu1 %534  ;;  %v533_v48 = vpop.permute.xlu0 %532 }
  0xf8   : > { %v508_v53 = vadd.f32 %v479_v45, %v434_v36 }
  0xf9   : > { %v460_v49 = vrot.slane %v435_v46, 7  ;;  %v484_v50 = vrot.slane %v435_v46, 1  ;;  %906 = vrot.lane.b32.xlu1 %v2496_v44, %s2014_s23  ;;  %882 = vrot.lane.b32.xlu0 %v2496_v44, %s2015_s20 }
  0xfb   : > { %v461_v54 = vsel %vm458_vm2, %v459_v42, %v460_v49  ;;  %v485_v55 = vsel %vm483_vm3, %v446_v41, %v484_v50  ;;  %v504_v56 = vsel %vm483_vm3, %v484_v50, %v460_v49  ;;  %v559_v57 = vpop.permute.xlu1 %558  ;;  %v557_v58 = vpop.permute.xlu0 %556  ;;  %v2530_v41 = vmul.f32 %v2324_v9, %v2317_v8 }
  0xfc   : > { %v509_v59 = vadd.f32 %v461_v54, %v435_v46  ;;  %v516_v60 = vadd.f32 %v508_v53, %v485_v55  ;;  %v581_v61 = vsel %vm408_vm0, %v535_v47, %v559_v57  ;;  %v589_v62 = vsel %vm417_vm1, %v535_v47, %v559_v57 }
  0xfd   : > { %v597_v63 = vadd.f32 %v581_v61, %v2271_v2  ;;  %v580_v30 = vsel %vm408_vm0, %v533_v48, %v557_v58  ;;  %v588_v31 = vsel %vm417_vm1, %v533_v48, %v557_v58  ;;  %1038 = vrot.lane.b32.xlu1 %v2505_v51, %s2015_s20  ;;  %1036 = vrot.lane.b32.xlu0 %v2509_v52, %s2015_s20 }
  0xfe   : > { %v517_v32 = vadd.f32 %v509_v59, %v504_v56  ;;  %v596_v33 = vadd.f32 %v580_v30, %v2274_v3  ;;  %3325 = vst [vmem:[#allocation17_spill] sm:$0xff] %v2530_v41  ;;  %v2534_v47 = vmul.f32 %v2354_v13, %v2347_v12 }
  0xff   : > { %v605_v34 = vadd.f32 %v597_v63, %v589_v62  ;;  %v703_v36 = vpop.permute.xlu1 %702  ;;  %v701_v37 = vpop.permute.xlu0 %700 }
 0x100   : > { %v604_v38 = vadd.f32 %v596_v33, %v588_v31  ;;  %3326 = vst [vmem:[#allocation18_spill] sm:$0xff] %v2534_v47 }
 0x101   : > { %v629_v39 = vrot.slane %v605_v34, 7  ;;  %v652_v40 = vrot.slane %v605_v34, 1  ;;  %1062 = vrot.lane.b32.xlu1 %v2505_v51, %s2014_s23  ;;  %1060 = vrot.lane.b32.xlu0 %v2509_v52, %s2014_s23 }
 0x102   : > { %v616_v42 = vrot.slane %v604_v38, 1  ;;  %v628_v43 = vrot.slane %v604_v38, 7 }
 0x103   : > { %v727_v45 = vpop.permute.xlu1 %726  ;;  %v725_v46 = vpop.permute.xlu0 %724  ;;  %v672_v58 = vsel %vm483_vm3, %v652_v40, %v629_v39 }
 0x104   : > { %v630_v48 = vsel %vm458_vm2, %v628_v43, %v629_v39  ;;  %v648_v49 = vsel %vm458_vm2, %v616_v42, %v628_v43  ;;  %v653_v50 = vsel %vm483_vm3, %v616_v42, %v652_v40  ;;  %v749_v53 = vsel %vm408_vm0, %v703_v36, %v727_v45 }
 0x105   : > { %v676_v54 = vadd.f32 %v648_v49, %v604_v38  ;;  %v677_v55 = vadd.f32 %v630_v48, %v605_v34  ;;  %v757_v56 = vsel %vm417_vm1, %v703_v36, %v727_v45  ;;  %v765_v57 = vadd.f32 %v749_v53, %v2286_v4  ;;  %1064 = vrot.lane.b32.xlu1 %v2530_v41, %s2014_s23 }
 0x106   : > { %v748_v59 = vsel %vm408_vm0, %v701_v37, %v725_v46  ;;  %v756_v61 = vsel %vm417_vm1, %v701_v37, %v725_v46  ;;  %1040 = vrot.lane.b32.xlu0 %v2530_v41, %s2015_s20  ;;  %v1204_v4 = vmul.f32 %v516_v60, %v516_v60  ;;  %v1205_v36 = vmul.f32 %v517_v32, %v517_v32 }
 0x107   : > { %v684_v62 = vadd.f32 %v676_v54, %v653_v50  ;;  %v685_v63 = vadd.f32 %v677_v55, %v672_v58  ;;  %v773_v30 = vadd.f32 %v765_v57, %v757_v56  ;;  %v764_v31 = vadd.f32 %v748_v59, %v2290_v5  ;;  %v871_v33 = vpop.permute.xlu1 %870  ;;  %v869_v34 = vpop.permute.xlu0 %868 }
 0x108   : > { %v2552_v38 = vmul.f32 %v2384_v17, %v2377_v16  ;;  %v2568_v55 = vmul.f32 %v2414_v21, %v2407_v20  ;;  %v2572_v56 = vmul.f32 %v2444_v25, %v2437_v24 }
 0x109   : > { %v1196_v39 = vmul.f32 %v684_v62, %v516_v60  ;;  %v1197_v40 = vmul.f32 %v685_v63, %v517_v32  ;;  %v1212_v42 = vmul.f32 %v684_v62, %v684_v62  ;;  %v1213_v37 = vmul.f32 %v685_v63, %v685_v63  ;;  %1066 = vrot.lane.b32.xlu1 %v2534_v47, %s2014_s23 }
 0x10a   : > { %3327 = vst [vmem:[#allocation19_spill] sm:$0xff] %v2552_v38  ;;  %v797_v43 = vrot.slane %v773_v30, 7  ;;  %v820_v45 = vrot.slane %v773_v30, 1  ;;  %v772_v46 = vadd.f32 %v764_v31, %v756_v61  ;;  %1042 = vrot.lane.b32.xlu0 %v2534_v47, %s2015_s20  ;;  %3328 = vst [vmem:[#allocation20_spill] sm:$0xff] %v2568_v55 }
 0x10b   : > { %v2558_v5 = vadd.f32 %v1212_v42, %v1204_v4  ;;  %v2560_v48 = vadd.f32 %v1213_v37, %v1205_v36  ;;  %v895_v49 = vpop.permute.xlu1 %894  ;;  %v893_v50 = vpop.permute.xlu0 %892  ;;  %3329 = vst [vmem:[#allocation21_spill] sm:$0xff] %v2572_v56 }
 0x10c   : > { %v784_v53 = vrot.slane %v772_v46, 1  ;;  %v796_v60 = vrot.slane %v772_v46, 7  ;;  %v917_v32 = vsel %vm408_vm0, %v871_v33, %v895_v49  ;;  %v925_v54 = vsel %vm417_vm1, %v871_v33, %v895_v49 }
 0x10d   : > { %1068 = vrot.lane.b32.xlu1 %v2552_v38, %s2014_s23  ;;  %v840_v57 = vsel %vm483_vm3, %v820_v45, %v797_v43  ;;  %v933_v31 = vadd.f32 %v917_v32, %v2302_v6  ;;  %v916_v33 = vsel %vm408_vm0, %v869_v34, %v893_v50  ;;  %v924_v42 = vsel %vm417_vm1, %v869_v34, %v893_v50 }
 0x10e   : > { %v798_v58 = vsel %vm458_vm2, %v796_v60, %v797_v43  ;;  %v816_v59 = vsel %vm458_vm2, %v784_v53, %v796_v60  ;;  %v821_v61 = vsel %vm483_vm3, %v784_v53, %v820_v45  ;;  %1044 = vrot.lane.b32.xlu0 %v2552_v38, %s2015_s20  ;;  %v932_v37 = vadd.f32 %v916_v33, %v2306_v7 }
 0x10f   : > { %v844_v62 = vadd.f32 %v816_v59, %v772_v46  ;;  %v845_v63 = vadd.f32 %v798_v58, %v773_v30  ;;  %v389_v4 = vpop.permute.xlu1 %388  ;;  %v365_v36 = vpop.permute.xlu0 %364  ;;  %v941_v60 = vadd.f32 %v933_v31, %v925_v54  ;;  %v1397_v30 = vsub.f32 %v2264_v1, %v2271_v2 }
 0x110   : > { %v411_v43 = vsel %vm408_vm0, %v365_v36, %v389_v4  ;;  %v420_v49 = vsel %vm417_vm1, %v365_v36, %v389_v4  ;;  %v940_v6 = vadd.f32 %v932_v37, %v924_v42  ;;  %v2606_v1 = vmul.f32 %v2474_v29, %v2467_v28 }
 0x111   : > { %v852_v45 = vadd.f32 %v844_v62, %v821_v61  ;;  %v853_v53 = vadd.f32 %v845_v63, %v840_v57  ;;  %v428_v46 = vadd.f32 %v411_v43, %v2317_v8  ;;  %1070 = vrot.lane.b32.xlu1 %v2568_v55, %s2014_s23  ;;  %v965_v7 = vrot.slane %v941_v60, 7 }
 0x112   : > { %1046 = vrot.lane.b32.xlu0 %v2568_v55, %s2015_s20  ;;  %v988_v34 = vrot.slane %v941_v60, 1  ;;  %v952_v57 = vrot.slane %v940_v6, 1  ;;  %v964_v54 = vrot.slane %v940_v6, 7  ;;  %v1396_v62 = vsub.f32 %v2257_v0, %v2274_v3  ;;  %3331 = vst [vmem:[#allocation23_spill] sm:$0xff] %v2606_v1 }
 0x113   : > { %v2593_v50 = vadd.f32 %v428_v46, %v420_v49  ;;  %v561_v32 = vpop.permute.xlu1 %560  ;;  %v537_v58 = vpop.permute.xlu0 %536  ;;  %v2599_v63 = vadd.f32 %v1196_v39, %v1196_v39  ;;  %v2608_v2 = vadd.f32 %v1197_v40, %v1197_v40 }
 0x114   : > { %v582_v59 = vsel %vm408_vm0, %v537_v58, %v561_v32  ;;  %v590_v61 = vsel %vm417_vm1, %v537_v58, %v561_v32  ;;  %v966_v33 = vsel %vm458_vm2, %v964_v54, %v965_v7  ;;  %v984_v4 = vsel %vm458_vm2, %v952_v57, %v964_v54 }
 0x115   : > { %3330 = vst [vmem:[#allocation22_spill] sm:$0xff] %v2599_v63  ;;  %v598_v31 = vadd.f32 %v582_v59, %v2324_v9  ;;  %1072 = vrot.lane.b32.xlu1 %v2572_v56, %s2014_s23  ;;  %3332 = vst [vmem:[#allocation24_spill] sm:$0xff] %v2608_v2  ;;  %v989_v36 = vsel %vm483_vm3, %v952_v57, %v988_v34  ;;  %v1008_v0 = vsel %vm483_vm3, %v988_v34, %v965_v7 }
 0x116   : > { %1048 = vrot.lane.b32.xlu0 %v2572_v56, %s2015_s20  ;;  %v1012_v3 = vadd.f32 %v984_v4, %v940_v6  ;;  %v1013_v39 = vadd.f32 %v966_v33, %v941_v60  ;;  %v3290_v40 = vrot.slane %v2593_v50, 1  ;;  %v3293_v49 = vrot.slane %v2593_v50, 7 }
 0x117   : > { %v2616_v42 = vadd.f32 %v598_v31, %v590_v61  ;;  %v729_v37 = vpop.permute.xlu1 %728  ;;  %v705_v43 = vpop.permute.xlu0 %704  ;;  %v2626_v60 = vand.u32 2147483647, %v1397_v30  ;;  %v2628_v6 = vand.u32 2147483647, %v1396_v62  ;;  %v2634_v59 = vadd.f32 0.0081, %v2599_v63 }
 0x118   : > { %v750_v46 = vsel %vm408_vm0, %v705_v43, %v729_v37  ;;  %v758_v32 = vsel %vm417_vm1, %v705_v43, %v729_v37  ;;  %v1020_v58 = vadd.f32 %v1012_v3, %v989_v36  ;;  %v1021_v57 = vadd.f32 %v1013_v39, %v1008_v0 }
 0x119   : > { %v3288_v54 = vrot.slane %v2616_v42, 1  ;;  %v3289_v7 = vrot.slane %v2616_v42, 7  ;;  %1074 = vrot.lane.b32.xlu1 %v2606_v1, %s2014_s23  ;;  %v766_v34 = vadd.f32 %v750_v46, %v2332_v10  ;;  %3333 = vst [vmem:[#allocation25_spill] sm:$0xff] %v2634_v59  ;;  %v2637_v61 = vadd.f32 0.0081, %v2608_v2  ;;  %v2773_v2 = vld [vmem:[%s2725_s25 + $0x38] sm:$0xff] }
 0x11a   : > { %1050 = vrot.lane.b32.xlu0 %v2606_v1, %s2015_s20  ;;  %v1284_v31 = vadd.f32 %v1020_v58, %v852_v45  ;;  %v1285_v33 = vadd.f32 %v1021_v57, %v853_v53  ;;  %v480_v30 = vsel %vm458_vm2, %v3290_v40, %v3293_v49  ;;  %v1276_v37 = vadd.f32 0.0081, %v2558_v5 }
 0x11b   : > { %3334 = vst [vmem:[#allocation26_spill] sm:$0xff] %v2637_v61  ;;  %v897_v4 = vpop.permute.xlu1 %896  ;;  %v873_v36 = vpop.permute.xlu0 %872  ;;  %v2644_v10 = vadd.f32 %v766_v34, %v758_v32  ;;  %v649_v45 = vsel %vm458_vm2, %v3288_v54, %v3289_v7  ;;  %v1277_v43 = vadd.f32 0.0081, %v2560_v48 }
 0x11c   : > { %v918_v62 = vsel %vm408_vm0, %v873_v36, %v897_v4  ;;  %v926_v0 = vsel %vm417_vm1, %v873_v36, %v897_v4  ;;  %v1292_v3 = vmul.f32 9.0, %v1284_v31  ;;  %v1293_v39 = vmul.f32 9.0, %v1285_v33 }
 0x11d   : > { %v934_v53 = vadd.f32 %v918_v62, %v2340_v11  ;;  %v3291_v46 = vrot.slane %v2644_v10, 1  ;;  %v3292_v32 = vrot.slane %v2644_v10, 7  ;;  %v1398_v4 = vsub.f32 %v2317_v8, %v2324_v9 }
 0x11e   : > { %v1300_v58 = vsub.f32 %v1292_v3, %v2558_v5  ;;  %v1301_v57 = vsub.f32 %v1293_v39, %v2560_v48  ;;  %v510_v11 = vadd.f32 %v480_v30, %v2593_v50  ;;  %v678_v36 = vadd.f32 %v649_v45, %v2616_v42 }
 0x11f   : > { %v2660_v34 = vadd.f32 %v934_v53, %v926_v0  ;;  %v391_v31 = vpop.permute.xlu1 %390  ;;  %v367_v33 = vpop.permute.xlu0 %366  ;;  %v1399_v48 = vsub.f32 %v2347_v12, %v2354_v13  ;;  %v817_v8 = vsel %vm458_vm2, %v3291_v46, %v3292_v32  ;;  %v1400_v0 = vsub.f32 %v2377_v16, %v2384_v17 }
 0x120   : > { %v412_v62 = vsel %vm408_vm0, %v367_v33, %v391_v31  ;;  %v421_v54 = vsel %vm417_vm1, %v367_v33, %v391_v31  ;;  %v1308_v7 = vadd.f32 0.0729, %v1300_v58  ;;  %v1309_v40 = vadd.f32 0.0729, %v1301_v57 }
 0x121   : > { %v3294_v5 = vrot.slane %v2660_v34, 1  ;;  %v3295_v9 = vrot.slane %v2660_v34, 7  ;;  %v429_v30 = vadd.f32 %v412_v62, %v2347_v12  ;;  %v1401_v58 = vsub.f32 %v2407_v20, %v2414_v21 }
 0x122   : > { %v2680_v3 = vmul.f32 %v1308_v7, %v1276_v37  ;;  %v2682_v39 = vmul.f32 %v1309_v40, %v1277_v43  ;;  %v2686_v57 = vand.u32 2147483647, %v1398_v4  ;;  %v1402_v12 = vsub.f32 %v2437_v24, %v2444_v25 }
 0x123   : > { %v563_v45 = vpop.permute.xlu1 %562  ;;  %v539_v53 = vpop.permute.xlu0 %538  ;;  %v437_v31 = vadd.f32 %v429_v30, %v421_v54  ;;  %v2694_v40 = vadd.f32 %v817_v8, %v2644_v10  ;;  %v985_v7 = vsel %vm458_vm2, %v3294_v5, %v3295_v9  ;;  %v1403_v4 = vsub.f32 %v2467_v28, %v2474_v29 }
 0x124   : > { %v583_v33 = vsel %vm408_vm0, %v539_v53, %v563_v45  ;;  %v591_v46 = vsel %vm417_vm1, %v539_v53, %v563_v45  ;;  %1788 = vrcp.f32 %v2680_v3  ;;  %v1407_v8 = vand.u32 2147483647, %v1399_v48 }
 0x125   : > { %v599_v54 = vadd.f32 %v583_v33, %v2354_v13  ;;  %1790 = vrcp.f32 %v2682_v39  ;;  %v463_v37 = vrot.slane %v437_v31, 7  ;;  %v486_v43 = vrot.slane %v437_v31, 1 }
 0x126   : > { %v1408_v53 = vand.u32 2147483647, %v1400_v0  ;;  %v1409_v32 = vand.u32 2147483647, %v1401_v58  ;;  %v2706_v49 = vadd.f32 %v985_v7, %v2660_v34  ;;  %v3335_v5 = vrot.slane %v2593_v50, 7 }
 0x127   : > { %v607_v62 = vadd.f32 %v599_v54, %v591_v46  ;;  %v731_v30 = vpop.permute.xlu1 %730  ;;  %v707_v45 = vpop.permute.xlu0 %706  ;;  %v3336_v33 = vrot.slane %v2593_v50, 1  ;;  %v505_v0 = vsel %vm483_vm3, %v486_v43, %v463_v37  ;;  %v1410_v61 = vand.u32 2147483647, %v1402_v12 }
 0x128   : > { %v464_v13 = vsel %vm458_vm2, %v3335_v5, %v463_v37  ;;  %v751_v29 = vsel %vm408_vm0, %v707_v45, %v731_v30  ;;  %v759_v58 = vsel %vm417_vm1, %v707_v45, %v731_v30  ;;  %v3337_v5 = vrot.slane %v2616_v42, 7  ;;  %v2731_v30 = vld [vmem:[%s2725_s25 + $0x8] sm:$0xff]  ;;  %v2734_v45 = vld [vmem:[%s2725_s25 + $0x10] sm:$0xff] }
 0x129   : > { %v487_v9 = vsel %vm483_vm3, %v3336_v33, %v486_v43  ;;  %v511_v46 = vadd.f32 %v464_v13, %v437_v31  ;;  %v632_v1 = vrot.slane %v607_v62, 7  ;;  %v654_v48 = vrot.slane %v607_v62, 1 }
 0x12a   : > { %v518_v54 = vadd.f32 %v510_v11, %v487_v9  ;;  %v767_v7 = vadd.f32 %v751_v29, %v2362_v14  ;;  %v3338_v33 = vrot.slane %v2616_v42, 1  ;;  %v2728_v9 = vld [vmem:[%s2725_s25] sm:$0xff]  ;;  %v1411_v14 = vand.u32 2147483647, %v1403_v4 }
 0x12b   : > { %v519_v56 = vadd.f32 %v511_v46, %v505_v0  ;;  %v633_v50 = vsel %vm458_vm2, %v3337_v5, %v632_v1  ;;  %v899_v31 = vpop.permute.xlu1 %898  ;;  %v875_v11 = vpop.permute.xlu0 %874  ;;  %v2738_v42 = vmul.f32 %v2628_v6, %v2728_v9  ;;  %v673_v13 = vsel %vm483_vm3, %v654_v48, %v632_v1 }
 0x12c   : > { %v655_v55 = vsel %vm483_vm3, %v3338_v33, %v654_v48  ;;  %v679_v12 = vadd.f32 %v633_v50, %v607_v62  ;;  %v775_v43 = vadd.f32 %v767_v7, %v759_v58  ;;  %v919_v29 = vsel %vm408_vm0, %v875_v11, %v899_v31  ;;  %v2748_v58 = vld [vmem:[%s2725_s25 + $0x18] sm:$0xff]  ;;  %v2753_v33 = vld [vmem:[%s2725_s25 + $0x20] sm:$0xff] }
 0x12d   : > { %v686_v37 = vadd.f32 %v678_v36, %v655_v55  ;;  %v927_v4 = vsel %vm417_vm1, %v875_v11, %v899_v31  ;;  %v2745_v55 = vmul.f32 %v2626_v60, %v2731_v30  ;;  %v1206_v1 = vmul.f32 %v518_v54, %v518_v54  ;;  %v2756_v31 = vld [vmem:[%s2725_s25 + $0x28] sm:$0xff]  ;;  %v2759_v60 = vld [vmem:[%s2725_s25 + $0x30] sm:$0xff] }
 0x12e   : > { %v687_v36 = vadd.f32 %v679_v12, %v673_v13  ;;  %v800_v0 = vrot.slane %v775_v43, 7  ;;  %v2750_v6 = vpop.eup %1788  ;;  %v1207_v48 = vmul.f32 %v519_v56, %v519_v56  ;;  %v822_v7 = vrot.slane %v775_v43, 1 }
 0x12f   : > { %v1198_v62 = vmul.f32 %v686_v37, %v518_v54  ;;  %v1214_v46 = vmul.f32 %v686_v37, %v686_v37  ;;  %v393_v5 = vpop.permute.xlu1 %392  ;;  %v369_v50 = vpop.permute.xlu0 %368  ;;  %v2763_v11 = vmul.f32 %v2686_v57, %v2734_v45  ;;  %v2769_v37 = vmul.f32 %v2750_v6, %v2680_v3 }
 0x130   : > { %v2765_v12 = vpop.eup %1790  ;;  %v1199_v54 = vmul.f32 %v687_v36, %v519_v56  ;;  %v1215_v13 = vmul.f32 %v687_v36, %v687_v36  ;;  %v935_v59 = vadd.f32 %v919_v29, %v2370_v15  ;;  %v3340_v38 = vrot.slane %v2644_v10, 7 }
 0x131   : > { %3339 = vst [vmem:[#allocation27_spill] sm:$0xff] %v2765_v12  ;;  %v2775_v63 = vadd.f32 %v1214_v46, %v1206_v1  ;;  %v3341_v57 = vrot.slane %v2644_v10, 1  ;;  %v2784_v52 = vmul.f32 %v1407_v8, %v2748_v58  ;;  %v2789_v56 = vmul.f32 %v1408_v53, %v2753_v33 }
 0x132   : > { %v801_v47 = vsel %vm458_vm2, %v3340_v38, %v800_v0  ;;  %v2786_v3 = vadd.f32 %v1215_v13, %v1207_v48  ;;  %v2792_v15 = vmul.f32 %v1409_v32, %v2756_v31  ;;  %v2795_v29 = vmul.f32 %v1410_v61, %v2759_v60 }
 0x133   : > { %v823_v41 = vsel %vm483_vm3, %v3341_v57, %v822_v7  ;;  %v2799_v38 = vmul.f32 %v2765_v12, %v2682_v39  ;;  %v2801_v10 = vadd.f32 %v1198_v62, %v1198_v62  ;;  %v847_v36 = vadd.f32 %v801_v47, %v775_v43  ;;  %v565_v8 = vpop.permute.xlu1 %564  ;;  %v541_v46 = vpop.permute.xlu0 %540 }
 0x134   : > { %v2804_v1 = vmul.f32 %v1411_v14, %v2773_v2  ;;  %v841_v32 = vsel %vm483_vm3, %v822_v7, %v800_v0  ;;  %v854_v61 = vadd.f32 %v2694_v40, %v823_v41  ;;  %v943_v48 = vadd.f32 %v935_v59, %v927_v4 }
 0x135   : > { %v855_v13 = vadd.f32 %v847_v36, %v841_v32  ;;  %v413_v39 = vsel %vm408_vm0, %v369_v50, %v393_v5  ;;  %v422_v62 = vsel %vm417_vm1, %v369_v50, %v393_v5  ;;  %v584_v47 = vsel %vm408_vm0, %v541_v46, %v565_v8 }
 0x136   : > { %v968_v43 = vrot.slane %v943_v48, 7  ;;  %v990_v57 = vrot.slane %v943_v48, 1  ;;  %v430_v14 = vadd.f32 %v413_v39, %v2377_v16  ;;  %v592_v51 = vsel %vm417_vm1, %v541_v46, %v565_v8 }
 0x137   : > { %v2815_v12 = vadd.f32 %v1199_v54, %v1199_v54  ;;  %v2818_v41 = vadd.f32 0.0081, %v2801_v10  ;;  %v600_v59 = vadd.f32 %v584_v47, %v2384_v17  ;;  %v733_v40 = vpop.permute.xlu1 %732  ;;  %v709_v4 = vpop.permute.xlu0 %708  ;;  %v3342_v0 = vrot.slane %v2660_v34, 7 }
 0x138   : > { %v3343_v5 = vrot.slane %v2660_v34, 1  ;;  %v1009_v50 = vsel %vm483_vm3, %v990_v57, %v968_v43  ;;  %v2828_v36 = vadd.f32 %v430_v14, %v422_v62  ;;  %v752_v17 = vsel %vm408_vm0, %v709_v4, %v733_v40 }
 0x139   : > { %v969_v7 = vsel %vm458_vm2, %v3342_v0, %v968_v43  ;;  %v2831_v46 = vadd.f32 %v600_v59, %v592_v51  ;;  %v760_v47 = vsel %vm417_vm1, %v709_v4, %v733_v40  ;;  %v768_v34 = vadd.f32 %v752_v17, %v2392_v18 }
 0x13a   : > { %v991_v16 = vsel %vm483_vm3, %v3343_v5, %v990_v57  ;;  %v1015_v54 = vadd.f32 %v969_v7, %v943_v48  ;;  %v448_v32 = vrot.slane %v2828_v36, 1  ;;  %v465_v39 = vrot.slane %v2828_v36, 7 }
 0x13b   : > { %v1022_v8 = vadd.f32 %v2706_v49, %v991_v16  ;;  %v3307_v62 = vrot.slane %v2831_v46, 1  ;;  %v634_v48 = vrot.slane %v2831_v46, 7  ;;  %v901_v43 = vpop.permute.xlu1 %900  ;;  %v877_v49 = vpop.permute.xlu0 %876  ;;  %v2840_v51 = vadd.f32 %v768_v34, %v760_v47 }
 0x13c   : > { %v1023_v0 = vadd.f32 %v1015_v54, %v1009_v50  ;;  %v920_v57 = vsel %vm408_vm0, %v877_v49, %v901_v43  ;;  %v1421_v14 = vsel %vm1420_vm4, %v2738_v42, 0.0  ;;  %v1422_v59 = vsel %vm1420_vm4, %v2745_v55, 0.0 }
 0x13d   : > { %v1286_v5 = vadd.f32 %v1022_v8, %v854_v61  ;;  %v1278_v18 = vadd.f32 0.0081, %v2775_v63  ;;  %v1279_v61 = vadd.f32 0.0081, %v2786_v3  ;;  %v481_v7 = vsel %vm458_vm2, %v448_v32, %v465_v39 }
 0x13e   : > { %v1287_v40 = vadd.f32 %v1023_v0, %v855_v13  ;;  %v650_v16 = vsel %vm458_vm2, %v3307_v62, %v634_v48  ;;  %v928_v42 = vsel %vm417_vm1, %v877_v49, %v901_v43  ;;  %v936_v55 = vadd.f32 %v920_v57, %v2400_v19 }
 0x13f   : > { %v1294_v4 = vmul.f32 9.0, %v1286_v5  ;;  %v395_v8 = vpop.permute.xlu1 %394  ;;  %v371_v13 = vpop.permute.xlu0 %370  ;;  %v1423_v17 = vadd.f32 %v1422_v59, %v1421_v14  ;;  %v1424_v47 = vsel %vm1420_vm4, %v2763_v11, 0.0  ;;  %v786_v34 = vrot.slane %v2840_v51, 1 }
 0x140   : > { %v1295_v50 = vmul.f32 9.0, %v1287_v40  ;;  %v802_v0 = vrot.slane %v2840_v51, 7  ;;  %v2864_v5 = vadd.f32 %v936_v55, %v928_v42  ;;  %v414_v53 = vsel %vm408_vm0, %v371_v13, %v395_v8 }
 0x141   : > { %v1302_v54 = vsub.f32 %v1294_v4, %v2775_v63  ;;  %v423_v49 = vsel %vm417_vm1, %v371_v13, %v395_v8  ;;  %v431_v63 = vadd.f32 %v414_v53, %v2407_v20  ;;  %v1425_v11 = vadd.f32 %v1424_v47, %v1423_v17 }
 0x142   : > { %v1303_v43 = vsub.f32 %v1295_v50, %v2786_v3  ;;  %v954_v57 = vrot.slane %v2864_v5, 1  ;;  %v970_v14 = vrot.slane %v2864_v5, 7  ;;  %v1426_v59 = vsel %vm1420_vm4, %v2784_v52, 0.0 }
 0x143   : > { %v1310_v19 = vadd.f32 0.0729, %v1302_v54  ;;  %v439_v42 = vadd.f32 %v431_v63, %v423_v49  ;;  %v567_v55 = vpop.permute.xlu1 %566  ;;  %v543_v62 = vpop.permute.xlu0 %542  ;;  %v1428_v3 = vsel %vm1420_vm4, %v2789_v56, 0.0  ;;  %v512_v50 = vadd.f32 %v481_v7, %v2828_v36 }
 0x144   : > { %v1311_v40 = vadd.f32 0.0729, %v1303_v43  ;;  %v680_v20 = vadd.f32 %v650_v16, %v2831_v46  ;;  %v585_v53 = vsel %vm408_vm0, %v543_v62, %v567_v55  ;;  %v1427_v54 = vadd.f32 %v1426_v59, %v1425_v11 }
 0x145   : > { %v1318_v4 = vmul.f32 %v1310_v19, %v1278_v18  ;;  %v818_v52 = vsel %vm458_vm2, %v786_v34, %v802_v0  ;;  %v466_v18 = vrot.slane %v439_v42, 7  ;;  %v488_v13 = vrot.slane %v439_v42, 1 }
 0x146   : > { %v1319_v8 = vmul.f32 %v1311_v40, %v1279_v61  ;;  %v601_v17 = vadd.f32 %v585_v53, %v2414_v21  ;;  %v1429_v56 = vadd.f32 %v1428_v3, %v1427_v54  ;;  %v1430_v7 = vsel %vm1420_vm4, %v2792_v15, 0.0 }
 0x147   : > { %1792 = vrcp.f32 %v1318_v4  ;;  %v986_v61 = vsel %vm458_vm2, %v954_v57, %v970_v14  ;;  %v467_v16 = vsel %vm458_vm2, %v465_v39, %v466_v18  ;;  %v593_v47 = vsel %vm417_vm1, %v543_v62, %v567_v55  ;;  %v735_v43 = vpop.permute.xlu1 %734  ;;  %v711_v19 = vpop.permute.xlu0 %710 }
 0x148   : > { %1794 = vrcp.f32 %v1319_v8  ;;  %v489_v21 = vsel %vm483_vm3, %v448_v32, %v488_v13  ;;  %v513_v49 = vadd.f32 %v467_v16, %v439_v42  ;;  %v609_v63 = vadd.f32 %v601_v17, %v593_v47 }
 0x149   : > { %v1432_v15 = vsel %vm1420_vm4, %v2795_v29, 0.0  ;;  %v520_v11 = vadd.f32 %v512_v50, %v489_v21  ;;  %v753_v59 = vsel %vm408_vm0, %v711_v19, %v735_v43  ;;  %v1431_v40 = vadd.f32 %v1430_v7, %v1429_v56 }
 0x14a   : > { %v1434_v39 = vsel %vm1420_vm4, %v2804_v1, 0.0  ;;  %v506_v62 = vsel %vm483_vm3, %v488_v13, %v466_v18  ;;  %v635_v55 = vrot.slane %v609_v63, 7  ;;  %v656_v3 = vrot.slane %v609_v63, 1 }
 0x14b   : > { %v769_v36 = vadd.f32 %v753_v59, %v2422_v22  ;;  %v521_v53 = vadd.f32 %v513_v49, %v506_v62  ;;  %v1208_v32 = vmul.f32 %v520_v11, %v520_v11  ;;  %v761_v42 = vsel %vm417_vm1, %v711_v19, %v735_v43  ;;  %v903_v54 = vpop.permute.xlu1 %902  ;;  %v879_v17 = vpop.permute.xlu0 %878 }
 0x14c   : > { %v1433_v29 = vadd.f32 %v1432_v15, %v1431_v40  ;;  %v636_v50 = vsel %vm458_vm2, %v634_v48, %v635_v55  ;;  %v3344_v56 = vrot.slane %v2831_v46, 1  ;;  %v1477_v18 = vsel %vm1420_vm4, %v2728_v9, 0.0 }
 0x14d   : > { %v1478_v22 = vsel %vm1420_vm4, %v2731_v30, 0.0  ;;  %v681_v13 = vadd.f32 %v636_v50, %v609_v63  ;;  %v777_v16 = vadd.f32 %v769_v36, %v761_v42  ;;  %v921_v47 = vsel %vm408_vm0, %v879_v17, %v903_v54 }
 0x14e   : > { %v657_v1 = vsel %vm483_vm3, %v3344_v56, %v656_v3  ;;  %v674_v43 = vsel %vm483_vm3, %v656_v3, %v635_v55  ;;  %v929_v19 = vsel %vm417_vm1, %v879_v17, %v903_v54  ;;  %v937_v48 = vadd.f32 %v921_v47, %v2430_v23 }
 0x14f   : > { %v688_v7 = vadd.f32 %v680_v20, %v657_v1  ;;  %v1435_v46 = vadd.f32 %v1434_v39, %v1433_v29  ;;  %v689_v49 = vadd.f32 %v681_v13, %v674_v43  ;;  %v803_v59 = vrot.slane %v777_v16, 7  ;;  %v397_v40 = vpop.permute.xlu1 %396  ;;  %v373_v30 = vpop.permute.xlu0 %372 }
 0x150   : > { %v1209_v63 = vmul.f32 %v521_v53, %v521_v53  ;;  %v824_v62 = vrot.slane %v777_v16, 1  ;;  %v945_v36 = vadd.f32 %v937_v48, %v929_v19  ;;  %v3345_v17 = vsub.f32 2.0, %v2769_v37 }
 0x151   : > { %v2919_v21 = vpop.eup %1792  ;;  %v1200_v15 = vmul.f32 %v688_v7, %v520_v11  ;;  %v1216_v9 = vmul.f32 %v688_v7, %v688_v7  ;;  %1436 = vadd.xlane.f32.xlu0 %v1435_v46  ;;  %v1201_v3 = vmul.f32 %v689_v49, %v521_v53  ;;  %v1217_v23 = vmul.f32 %v689_v49, %v689_v49 }
 0x152   : > { %v2922_v20 = vmul.f32 %v2919_v21, %v1318_v4  ;;  %v2924_v55 = vpop.eup %1794  ;;  %v2931_v11 = vadd.f32 0.0081, %v2815_v12  ;;  %v848_v4 = vadd.f32 %v818_v52, %v2840_v51  ;;  %v2940_v29 = vmul.f32 %v2750_v6, %v3345_v17 }
 0x153   : > { %v2926_v39 = vadd.f32 %v1200_v15, %v1200_v15  ;;  %v2928_v42 = vadd.f32 %v1216_v9, %v1208_v32  ;;  %v2934_v54 = vmul.f32 %v2924_v55, %v1319_v8  ;;  %v1016_v53 = vadd.f32 %v986_v61, %v2864_v5  ;;  %v569_v1 = vpop.permute.xlu1 %568  ;;  %v545_v8 = vpop.permute.xlu0 %544 }
 0x154   : > { %v2943_v50 = vadd.f32 %v1217_v23, %v1209_v63  ;;  %v804_v32 = vsel %vm458_vm2, %v802_v0, %v803_v59  ;;  %v415_v56 = vsel %vm408_vm0, %v373_v30, %v397_v40  ;;  %v1342_v13 = vsub.f32 2.0, %v2922_v20 }
 0x155   : > { %v2950_v52 = vadd.f32 %v1201_v3, %v1201_v3  ;;  %v825_v6 = vsel %vm483_vm3, %v786_v34, %v824_v62  ;;  %v1479_v37 = vadd.f32 %v1478_v22, %v1477_v18  ;;  %v2956_v61 = vadd.f32 0.0081, %v2926_v39 }
 0x156   : > { %v1280_v7 = vadd.f32 0.0081, %v2928_v42  ;;  %v971_v47 = vrot.slane %v945_v36, 7  ;;  %v992_v0 = vrot.slane %v945_v36, 1  ;;  %v1343_v43 = vsub.f32 2.0, %v2934_v54 }
 0x157   : > { %v849_v19 = vadd.f32 %v804_v32, %v777_v16  ;;  %v432_v48 = vadd.f32 %v415_v56, %v2437_v24  ;;  %v586_v46 = vsel %vm408_vm0, %v545_v8, %v569_v1  ;;  %v842_v49 = vsel %vm483_vm3, %v824_v62, %v803_v59  ;;  %v737_v22 = vpop.permute.xlu1 %736  ;;  %v713_v15 = vpop.permute.xlu0 %712 }
 0x158   : > { %v856_v51 = vadd.f32 %v848_v4, %v825_v6  ;;  %v972_v34 = vsel %vm458_vm2, %v970_v14, %v971_v47  ;;  %v993_v18 = vsel %vm483_vm3, %v954_v57, %v992_v0  ;;  %v424_v16 = vsel %vm417_vm1, %v373_v30, %v397_v40 }
 0x159   : > { %v1017_v9 = vadd.f32 %v972_v34, %v945_v36  ;;  %v1024_v63 = vadd.f32 %v1016_v53, %v993_v18  ;;  %v602_v24 = vadd.f32 %v586_v46, %v2444_v25  ;;  %v1010_v3 = vsel %vm483_vm3, %v992_v0, %v971_v47 }
 0x15a   : > { %v2972_v59 = vadd.f32 %v432_v48, %v424_v16  ;;  %v754_v62 = vsel %vm408_vm0, %v713_v15, %v737_v22  ;;  %v1480_v14 = vsel %vm1420_vm4, %v2734_v45, 0.0  ;;  %v857_v5 = vadd.f32 %v849_v19, %v842_v49 }
 0x15b   : > { %v1025_v23 = vadd.f32 %v1017_v9, %v1010_v3  ;;  %v1288_v57 = vadd.f32 %v1024_v63, %v856_v51  ;;  %v594_v54 = vsel %vm417_vm1, %v545_v8, %v569_v1  ;;  %v762_v40 = vsel %vm417_vm1, %v713_v15, %v737_v22  ;;  %v905_v30 = vpop.permute.xlu1 %904  ;;  %v881_v4 = vpop.permute.xlu0 %880 }
 0x15c   : > { %v2978_v36 = vadd.f32 %v602_v24, %v594_v54  ;;  %v770_v25 = vadd.f32 %v754_v62, %v2452_v26  ;;  %v1481_v17 = vadd.f32 %v1480_v14, %v1479_v37  ;;  %v922_v56 = vsel %vm408_vm0, %v881_v4, %v905_v30 }
 0x15d   : > { %v1289_v53 = vadd.f32 %v1025_v23, %v857_v5  ;;  %v1296_v32 = vmul.f32 9.0, %v1288_v57  ;;  %v1482_v45 = vsel %vm1420_vm4, %v2748_v58, 0.0  ;;  %v449_v6 = vrot.slane %v2972_v59, 1 }
 0x15e   : > { %v468_v1 = vrot.slane %v2972_v59, 7  ;;  %v619_v8 = vrot.slane %v2978_v36, 1  ;;  %v2988_v47 = vadd.f32 %v770_v25, %v762_v40  ;;  %v637_v37 = vrot.slane %v2978_v36, 7 }
 0x15f   : > { %v1297_v0 = vmul.f32 9.0, %v1289_v53  ;;  %v1304_v26 = vsub.f32 %v1296_v32, %v2928_v42  ;;  %v938_v19 = vadd.f32 %v922_v56, %v2460_v27  ;;  %v930_v58 = vsel %vm417_vm1, %v881_v4, %v905_v30  ;;  %v399_v49 = vpop.permute.xlu1 %398  ;;  %v375_v51 = vpop.permute.xlu0 %374  ;;  %v1806_v30 = vld [vmem:[%s2250_s13 + $0x38] sm:$0xff] }
 0x160   : > { %v787_v48 = vrot.slane %v2988_v47, 1  ;;  %v805_v46 = vrot.slane %v2988_v47, 7  ;;  %v1483_v34 = vadd.f32 %v1482_v45, %v1481_v17  ;;  %v2997_v18 = vadd.f32 0.0081, %v2950_v52 }
 0x161   : > { %v1305_v22 = vsub.f32 %v1297_v0, %v2943_v50  ;;  %v1312_v15 = vadd.f32 0.0729, %v1304_v26  ;;  %v3000_v42 = vadd.f32 %v938_v19, %v930_v58  ;;  %v1281_v9 = vadd.f32 0.0081, %v2943_v50 }
 0x162   : > { %v416_v27 = vsel %vm408_vm0, %v375_v51, %v399_v49  ;;  %v3005_v63 = vmul.f32 %v2924_v55, %v1343_v43  ;;  %v1484_v16 = vsel %vm1420_vm4, %v2753_v33, 0.0  ;;  %v482_v62 = vsel %vm458_vm2, %v449_v6, %v468_v1 }
 0x163   : > { %v1313_v24 = vadd.f32 0.0729, %v1305_v22  ;;  %v3009_v3 = vmul.f32 %v1312_v15, %v1280_v7  ;;  %v651_v14 = vsel %vm458_vm2, %v619_v8, %v637_v37  ;;  %v819_v55 = vsel %vm458_vm2, %v787_v48, %v805_v46  ;;  %v571_v43 = vpop.permute.xlu1 %570  ;;  %v547_v33 = vpop.permute.xlu0 %546 }
 0x164   : > { %v433_v50 = vadd.f32 %v416_v27, %v2467_v28  ;;  %v1485_v5 = vadd.f32 %v1484_v16, %v1483_v34  ;;  %v1486_v7 = vsel %vm1420_vm4, %v2756_v31, 0.0  ;;  %v955_v23 = vrot.slane %v3000_v42, 1 }
 0x165   : > { %v973_v57 = vrot.slane %v3000_v42, 7  ;;  %v425_v54 = vsel %vm417_vm1, %v375_v51, %v399_v49  ;;  %v587_v40 = vsel %vm408_vm0, %v547_v33, %v571_v43  ;;  %1796 = vrcp.f32 %v3009_v3 }
 0x166   : > { %v441_v25 = vadd.f32 %v433_v50, %v425_v54  ;;  %v603_v4 = vadd.f32 %v1806_v30, %v587_v40  ;;  %v1487_v28 = vadd.f32 %v1486_v7, %v1485_v5  ;;  %v3029_v17 = vmul.f32 %v1313_v24, %v1281_v9 }
 0x167   : > { %v514_v53 = vadd.f32 %v482_v62, %v2972_v59  ;;  %v595_v31 = vsel %vm417_vm1, %v547_v33, %v571_v43  ;;  %v1488_v32 = vsel %vm1420_vm4, %v2759_v60, 0.0  ;;  %v739_v26 = vpop.permute.xlu1 %738  ;;  %v715_v19 = vpop.permute.xlu0 %714  ;;  %v682_v49 = vadd.f32 %v651_v14, %v2978_v36 }
 0x168   : > { %v469_v56 = vrot.slane %v441_v25, 7  ;;  %v490_v45 = vrot.slane %v441_v25, 1  ;;  %v611_v0 = vadd.f32 %v603_v4, %v595_v31  ;;  %v1489_v58 = vadd.f32 %v1488_v32, %v1487_v28 }
 0x169   : > { %v850_v51 = vadd.f32 %v819_v55, %v2988_v47  ;;  %v755_v34 = vsel %vm408_vm0, %v715_v19, %v739_v26  ;;  %v1490_v59 = vsel %vm1420_vm4, %v2773_v2, 0.0  ;;  %v987_v60 = vsel %vm458_vm2, %v955_v23, %v973_v57 }
 0x16a   : > { %v470_v22 = vsel %vm458_vm2, %v468_v1, %v469_v56  ;;  %v491_v15 = vsel %vm483_vm3, %v449_v6, %v490_v45  ;;  %v638_v9 = vrot.slane %v611_v0, 7  ;;  %v658_v24 = vrot.slane %v611_v0, 1 }
 0x16b   : > { %v515_v27 = vadd.f32 %v470_v22, %v441_v25  ;;  %v522_v16 = vadd.f32 %v514_v53, %v491_v15  ;;  %v771_v62 = vadd.f32 %v755_v34, %v2485_v35  ;;  %1798 = vrcp.f32 %v3029_v17  ;;  %v907_v55 = vpop.permute.xlu1 %906  ;;  %v883_v50 = vpop.permute.xlu0 %882 }
 0x16c   : > { %v507_v2 = vsel %vm483_vm3, %v490_v45, %v469_v56  ;;  %v639_v14 = vsel %vm458_vm2, %v637_v37, %v638_v9  ;;  %v1491_v43 = vadd.f32 %v1490_v59, %v1489_v58  ;;  %v1018_v33 = vadd.f32 %v987_v60, %v3000_v42 }
 0x16d   : > { %v523_v1 = vadd.f32 %v515_v27, %v507_v2  ;;  %v659_v6 = vsel %vm483_vm3, %v619_v8, %v658_v24  ;;  %v763_v5 = vsel %vm417_vm1, %v715_v19, %v739_v26  ;;  %v683_v7 = vadd.f32 %v639_v14, %v611_v0  ;;  %v3347_v19 = vld [vmem:[#allocation27_spill] sm:$0xff] }
 0x16e   : > { %v690_v35 = vadd.f32 %v682_v49, %v659_v6  ;;  %v779_v54 = vadd.f32 %v771_v62, %v763_v5  ;;  %v923_v40 = vsel %vm408_vm0, %v883_v50, %v907_v55  ;;  %1492 = vadd.xlane.f32.xlu0 %v1491_v43  ;;  %v1210_v25 = vmul.f32 %v522_v16, %v522_v16  ;;  %v3348_v6 = vld [vmem:[#allocation15_spill] sm:$0xff] }
 0x16f   : > { %v675_v37 = vsel %vm483_vm3, %v658_v24, %v638_v9  ;;  %v931_v30 = vsel %vm417_vm1, %v883_v50, %v907_v55  ;;  %v939_v4 = vadd.f32 %v923_v40, %v2496_v44  ;;  %v3060_v28 = vpop.eup %1796  ;;  %v1039_v32 = vpop.permute.xlu1 %1038  ;;  %v3346_v26 = vsub.f32 2.0, %v2799_v38  ;;  %v3349_v40 = vld [vmem:[#allocation16_spill] sm:$0xff] }
 0x170   : > { %v691_v36 = vadd.f32 %v683_v7, %v675_v37  ;;  %v1202_v53 = vmul.f32 %v690_v35, %v522_v16  ;;  %v1218_v8 = vmul.f32 %v690_v35, %v690_v35  ;;  %v806_v31 = vrot.slane %v779_v54, 7  ;;  %v1037_v56 = vpop.permute.xlu0 %1036 }
 0x171   : > { %v826_v45 = vrot.slane %v779_v54, 1  ;;  %v947_v0 = vadd.f32 %v939_v4, %v931_v30  ;;  %v3065_v58 = vmul.f32 %v3347_v19, %v3346_v26  ;;  %v3070_v49 = vmul.f32 %v2919_v21, %v1342_v13 }
 0x172   : > { %v1211_v44 = vmul.f32 %v523_v1, %v523_v1  ;;  %v1203_v34 = vmul.f32 %v691_v36, %v523_v1  ;;  %v1219_v59 = vmul.f32 %v691_v36, %v691_v36  ;;  %v1234_v60 = vadd.f32 %v1218_v8, %v1210_v25 }
 0x173   : > { %v807_v22 = vsel %vm458_vm2, %v805_v46, %v806_v31  ;;  %v827_v38 = vsel %vm483_vm3, %v787_v48, %v826_v45  ;;  %v974_v15 = vrot.slane %v947_v0, 7  ;;  %v3080_v9 = vmul.f32 %v3060_v28, %v3009_v3  ;;  %v1063_v16 = vpop.permute.xlu1 %1062 }
 0x174   : > { %v3082_v20 = vadd.f32 %v1202_v53, %v1202_v53  ;;  %v3084_v21 = vadd.f32 %v1203_v34, %v1203_v34  ;;  %v843_v13 = vsel %vm483_vm3, %v826_v45, %v806_v31  ;;  %v851_v27 = vadd.f32 %v807_v22, %v779_v54  ;;  %v1061_v24 = vpop.permute.xlu0 %1060 }
 0x175   : > { %v1235_v62 = vadd.f32 %v1219_v59, %v1211_v44  ;;  %v975_v47 = vsel %vm458_vm2, %v973_v57, %v974_v15  ;;  %v994_v48 = vrot.slane %v947_v0, 1  ;;  %v1085_v46 = vsel %vm408_vm0, %v1039_v32, %v1063_v16  ;;  %v3091_v2 = vpop.eup %1798 }
 0x176   : > { %v1282_v3 = vadd.f32 0.0081, %v1234_v60  ;;  %v858_v14 = vadd.f32 %v850_v51, %v827_v38  ;;  %v859_v55 = vadd.f32 %v851_v27, %v843_v13  ;;  %v1019_v50 = vadd.f32 %v975_v47, %v947_v0  ;;  %v3350_v0 = vld [vmem:[#allocation17_spill] sm:$0xff] }
 0x177   : > { %v995_v43 = vsel %vm483_vm3, %v955_v23, %v994_v48  ;;  %v1011_v1 = vsel %vm483_vm3, %v994_v48, %v974_v15  ;;  %v1101_v5 = vadd.f32 %v1085_v46, %v3348_v6  ;;  %v1084_v7 = vsel %vm408_vm0, %v1037_v56, %v1061_v24  ;;  %v1065_v37 = vpop.permute.xlu1 %1064 }
 0x178   : > { %v1026_v57 = vadd.f32 %v1018_v33, %v995_v43  ;;  %v1027_v35 = vadd.f32 %v1019_v50, %v1011_v1  ;;  %v1093_v54 = vsel %vm417_vm1, %v1039_v32, %v1063_v16  ;;  %v1100_v25 = vadd.f32 %v1084_v7, %v3349_v40  ;;  %v1041_v42 = vpop.permute.xlu0 %1040 }
 0x179   : > { %v1283_v51 = vadd.f32 0.0081, %v1235_v62  ;;  %v1109_v30 = vadd.f32 %v1101_v5, %v1093_v54  ;;  %v1092_v4 = vsel %vm417_vm1, %v1037_v56, %v1061_v24  ;;  %v3103_v23 = vadd.f32 0.0081, %v3082_v20 }
 0x17a   : > { %v1290_v36 = vadd.f32 %v1026_v57, %v858_v14  ;;  %v1291_v53 = vadd.f32 %v1027_v35, %v859_v55  ;;  %v1108_v8 = vadd.f32 %v1100_v25, %v1092_v4  ;;  %v1086_v31 = vsel %vm408_vm0, %v1041_v42, %v1065_v37  ;;  %v3351_v35 = vld [vmem:[#allocation18_spill] sm:$0xff] }
 0x17b   : > { %v1133_v33 = vrot.slane %v1109_v30, 7  ;;  %v1156_v45 = vrot.slane %v1109_v30, 1  ;;  %v1094_v32 = vsel %vm417_vm1, %v1041_v42, %v1065_v37  ;;  %v1102_v26 = vadd.f32 %v1086_v31, %v3350_v0  ;;  %v1067_v56 = vpop.permute.xlu1 %1066  ;;  %v3352_v31 = vld [vmem:[#allocation19_spill] sm:$0xff] }
 0x17c   : > { %v1298_v19 = vmul.f32 9.0, %v1290_v36  ;;  %v1299_v44 = vmul.f32 9.0, %v1291_v53  ;;  %v1120_v34 = vrot.slane %v1108_v8, 1  ;;  %v1132_v59 = vrot.slane %v1108_v8, 7  ;;  %v1043_v15 = vpop.permute.xlu0 %1042 }
 0x17d   : > { %v1176_v22 = vsel %vm483_vm3, %v1156_v45, %v1133_v33  ;;  %v1110_v38 = vadd.f32 %v1102_v26, %v1094_v32  ;;  %v3110_v13 = vadd.f32 0.0081, %v3084_v21  ;;  %v3114_v27 = vmul.f32 %v3091_v2, %v3029_v17 }
 0x17e   : > { %v1306_v16 = vsub.f32 %v1298_v19, %v1234_v60  ;;  %v1307_v24 = vsub.f32 %v1299_v44, %v1235_v62  ;;  %v1134_v47 = vsel %vm458_vm2, %v1132_v59, %v1133_v33  ;;  %v1152_v48 = vsel %vm458_vm2, %v1120_v34, %v1132_v59 }
 0x17f   : > { %v1157_v46 = vsel %vm483_vm3, %v1120_v34, %v1156_v45  ;;  %v1180_v14 = vadd.f32 %v1152_v48, %v1108_v8  ;;  %v1181_v55 = vadd.f32 %v1134_v47, %v1109_v30  ;;  %v1121_v50 = vrot.slane %v1110_v38, 1  ;;  %v1069_v7 = vpop.permute.xlu1 %1068 }
 0x180   : > { %v1314_v43 = vadd.f32 0.0729, %v1306_v16  ;;  %v1315_v1 = vadd.f32 0.0729, %v1307_v24  ;;  %v1135_v6 = vrot.slane %v1110_v38, 7  ;;  %v1087_v5 = vsel %vm408_vm0, %v1043_v15, %v1067_v56  ;;  %v1045_v62 = vpop.permute.xlu0 %1044 }
 0x181   : > { %v1188_v57 = vadd.f32 %v1180_v14, %v1157_v46  ;;  %v1189_v17 = vadd.f32 %v1181_v55, %v1176_v22  ;;  %v1103_v60 = vadd.f32 %v1087_v5, %v3351_v35  ;;  %v1344_v54 = vsub.f32 2.0, %v3080_v9  ;;  %v3353_v9 = vld [vmem:[#allocation22_spill] sm:$0xff] }
 0x182   : > { %v1095_v40 = vsel %vm417_vm1, %v1043_v15, %v1067_v56  ;;  %v1088_v25 = vsel %vm408_vm0, %v1045_v62, %v1069_v7  ;;  %v3124_v37 = vmul.f32 %v1314_v43, %v1282_v3  ;;  %v1345_v30 = vsub.f32 2.0, %v3114_v27  ;;  %v3354_v3 = vld [vmem:[#allocation24_spill] sm:$0xff]  ;;  %v3355_v43 = vld [vmem:[#allocation25_spill] sm:$0xff] }
 0x183   : > { %v1244_v4 = vmul.f32 18.0, %v1188_v57  ;;  %v1245_v42 = vmul.f32 18.0, %v1189_v17  ;;  %v1153_v36 = vsel %vm458_vm2, %v1121_v50, %v1135_v6  ;;  %v1111_v53 = vadd.f32 %v1103_v60, %v1095_v40  ;;  %v1071_v45 = vpop.permute.xlu1 %1070  ;;  %v3357_v40 = vld [vmem:[#allocation21_spill] sm:$0xff] }
 0x184   : > { %v1096_v8 = vsel %vm417_vm1, %v1045_v62, %v1069_v7  ;;  %v1104_v33 = vadd.f32 %v1088_v25, %v3352_v31  ;;  %v3130_v32 = vmul.f32 %v1315_v1, %v1283_v51  ;;  %1800 = vrcp.f32 %v3124_v37  ;;  %v1047_v34 = vpop.permute.xlu0 %1046  ;;  %v3356_v7 = vld [vmem:[#allocation20_spill] sm:$0xff] }
 0x185   : > { %v1252_v0 = vsub.f32 %v1244_v4, %v3353_v9  ;;  %v1253_v26 = vsub.f32 %v1245_v42, %v3354_v3  ;;  %v1136_v19 = vrot.slane %v1111_v53, 7  ;;  %v1158_v44 = vrot.slane %v1111_v53, 1  ;;  %v3358_v4 = vld [vmem:[#allocation26_spill] sm:$0xff] }
 0x186   : > { %v1182_v59 = vadd.f32 %v1153_v36, %v1110_v38  ;;  %v1112_v56 = vadd.f32 %v1104_v33, %v1096_v8  ;;  %v1089_v22 = vsel %vm408_vm0, %v1047_v34, %v1071_v45  ;;  %1802 = vrcp.f32 %v3130_v32 }
 0x187   : > { %v1260_v15 = vadd.f32 0.0729, %v1252_v0  ;;  %v1137_v16 = vsel %vm458_vm2, %v1135_v6, %v1136_v19  ;;  %v1159_v51 = vsel %vm483_vm3, %v1121_v50, %v1158_v44  ;;  %v3140_v24 = vmul.f32 %v3060_v28, %v1344_v54  ;;  %v1073_v55 = vpop.permute.xlu1 %1072 }
 0x188   : > { %v1261_v47 = vadd.f32 0.0729, %v1253_v26  ;;  %v1183_v48 = vadd.f32 %v1137_v16, %v1111_v53  ;;  %v1190_v46 = vadd.f32 %v1182_v59, %v1159_v51  ;;  %v1122_v14 = vrot.slane %v1112_v56, 1  ;;  %v1049_v17 = vpop.permute.xlu0 %1048 }
 0x189   : > { %v1268_v38 = vmul.f32 %v1260_v15, %v3355_v43  ;;  %v1177_v1 = vsel %vm483_vm3, %v1158_v44, %v1136_v19  ;;  %v1138_v5 = vrot.slane %v1112_v56, 7  ;;  %v1105_v57 = vadd.f32 %v1089_v22, %v3356_v7 }
 0x18a   : > { %v1191_v35 = vadd.f32 %v1183_v48, %v1177_v1  ;;  %v1246_v6 = vmul.f32 18.0, %v1190_v46  ;;  %v1097_v50 = vsel %vm417_vm1, %v1047_v34, %v1071_v45  ;;  %v1090_v28 = vsel %vm408_vm0, %v1049_v17, %v1073_v55 }
 0x18b   : > { %v1356_v60 = vmul.f32 %v2940_v29, %v1268_v38  ;;  %v1154_v62 = vsel %vm458_vm2, %v1122_v14, %v1138_v5  ;;  %v1113_v54 = vadd.f32 %v1105_v57, %v1097_v50  ;;  %v1106_v25 = vadd.f32 %v1090_v28, %v3357_v40  ;;  %v1075_v31 = vpop.permute.xlu1 %1074  ;;  %v3359_v38 = vld [vmem:[#allocation23_spill] sm:$0xff] }
 0x18c   : > { %v1269_v42 = vmul.f32 %v1261_v47, %v3358_v4  ;;  %v1247_v36 = vmul.f32 18.0, %v1191_v35  ;;  %v1254_v53 = vsub.f32 %v1246_v6, %v2801_v10  ;;  %v1098_v8 = vsel %vm417_vm1, %v1049_v17, %v1073_v55  ;;  %v1051_v3 = vpop.permute.xlu0 %1050 }
 0x18d   : > { %v1364_v33 = vsub.f32 1.0, %v1356_v60  ;;  %v1139_v9 = vrot.slane %v1113_v54, 7  ;;  %v1160_v45 = vrot.slane %v1113_v54, 1  ;;  %v1114_v0 = vadd.f32 %v1106_v25, %v1098_v8 }
 0x18e   : > { %v1801_v26 = vpop.eup %1800  ;;  %v1255_v29 = vsub.f32 %v1247_v36, %v2815_v12  ;;  %v1262_v19 = vadd.f32 0.0729, %v1254_v53  ;;  %v1184_v44 = vadd.f32 %v1154_v62, %v1112_v56  ;;  %v1091_v34 = vsel %vm408_vm0, %v1051_v3, %v1075_v31 }
 0x18f   : > { %v1372_v59 = vmul.f32 0.5, %v1364_v33  ;;  %v1140_v22 = vsel %vm458_vm2, %v1138_v5, %v1139_v9  ;;  %v1161_v10 = vsel %vm483_vm3, %v1122_v14, %v1160_v45  ;;  %v1099_v15 = vsel %vm417_vm1, %v1051_v3, %v1075_v31 }
 0x190   : > { %v1803_v16 = vpop.eup %1802  ;;  %v1263_v51 = vadd.f32 0.0729, %v1255_v29  ;;  %v1178_v47 = vsel %vm483_vm3, %v1160_v45, %v1139_v9  ;;  %v1185_v48 = vadd.f32 %v1140_v22, %v1113_v54  ;;  %v1192_v46 = vadd.f32 %v1184_v44, %v1161_v10 }
 0x191   : > { %v1380_v55 = vmax.f32 %v1372_v59, 0.0  ;;  %v1123_v43 = vrot.slane %v1114_v0, 1  ;;  %v1141_v12 = vrot.slane %v1114_v0, 7  ;;  %v1107_v56 = vadd.f32 %v1091_v34, %v3359_v38 }
 0x192   : > { %v1270_v1 = vmul.f32 %v1262_v19, %v2818_v41  ;;  %v1271_v7 = vmul.f32 %v1263_v51, %v2931_v11  ;;  %v1193_v5 = vadd.f32 %v1185_v48, %v1178_v47  ;;  %v1248_v57 = vmul.f32 18.0, %v1192_v46  ;;  %v1807_v51 = vld [vmem:[%s2725_s25] sm:$0xff] }
 0x193   : > { %v1155_v14 = vsel %vm458_vm2, %v1123_v43, %v1141_v12  ;;  %v1115_v17 = vadd.f32 %v1107_v56, %v1099_v15  ;;  %v1338_v35 = vmul.f32 %v1801_v26, %v3124_v37  ;;  %v1339_v6 = vmul.f32 %v1803_v16, %v3130_v32 }
 0x194   : > { %v1359_v50 = vmul.f32 %v3005_v63, %v1271_v7  ;;  %v1249_v28 = vmul.f32 18.0, %v1193_v5  ;;  %v1256_v60 = vsub.f32 %v1248_v57, %v2926_v39  ;;  %v1353_v41 = vmul.f32 %v3091_v2, %v1345_v30  ;;  %v1808_v7 = vld [vmem:[%s2725_s25 + $0x8] sm:$0xff]  ;;  %v1809_v57 = vld [vmem:[%s2725_s25 + $0x10] sm:$0xff] }
 0x195   : > { %v1388_v62 = vmin.f32 %v1380_v55, 1.0  ;;  %v1186_v11 = vadd.f32 %v1155_v14, %v1114_v0  ;;  %v1142_v54 = vrot.slane %v1115_v17, 7  ;;  %v1162_v40 = vrot.slane %v1115_v17, 1 }
 0x196   : > { %v1257_v25 = vsub.f32 %v1249_v28, %v2950_v52  ;;  %v1264_v4 = vadd.f32 0.0729, %v1256_v60  ;;  %v1357_v37 = vmul.f32 %v3065_v58, %v1269_v42  ;;  %v1358_v32 = vmul.f32 %v3070_v49, %v1270_v1 }
 0x197   : > { %v1143_v63 = vsel %vm458_vm2, %v1141_v12, %v1142_v54  ;;  %v1163_v36 = vsel %vm483_vm3, %v1123_v43, %v1162_v40  ;;  %v1346_v39 = vsub.f32 2.0, %v1338_v35  ;;  %v1347_v53 = vsub.f32 2.0, %v1339_v6 }
 0x198   : > { %v1265_v27 = vadd.f32 0.0729, %v1257_v25  ;;  %v1187_v8 = vadd.f32 %v1143_v63, %v1115_v17  ;;  %v1194_v2 = vadd.f32 %v1186_v11, %v1163_v36  ;;  %v1272_v30 = vmul.f32 %v1264_v4, %v2956_v61  ;;  %v1810_v17 = vld [vmem:[%s2725_s25 + $0x18] sm:$0xff] }
 0x199   : > { %v1179_v31 = vsel %vm483_vm3, %v1162_v40, %v1142_v54  ;;  %v1365_v33 = vsub.f32 1.0, %v1357_v37  ;;  %v1366_v52 = vsub.f32 1.0, %v1358_v32  ;;  %v1367_v9 = vsub.f32 1.0, %v1359_v50  ;;  %v1811_v54 = vld [vmem:[%s2725_s25 + $0x20] sm:$0xff]  ;;  %v1812_v32 = vld [vmem:[%s2725_s25 + $0x28] sm:$0xff] }
 0x19a   : > { %v1273_v58 = vmul.f32 %v1265_v27, %v2997_v18  ;;  %v1195_v49 = vadd.f32 %v1187_v8, %v1179_v31  ;;  %v1250_v42 = vmul.f32 18.0, %v1194_v2  ;;  %v1360_v45 = vmul.f32 %v3140_v24, %v1272_v30 }
 0x19b   : > { %v1354_v0 = vmul.f32 %v1801_v26, %v1346_v39  ;;  %v1373_v3 = vmul.f32 0.5, %v1365_v33  ;;  %v1374_v29 = vmul.f32 0.5, %v1366_v52  ;;  %v1375_v19 = vmul.f32 0.5, %v1367_v9  ;;  %v1813_v9 = vld [vmem:[%s2725_s25 + $0x30] sm:$0xff] }
 0x19c   : > { %v1251_v44 = vmul.f32 18.0, %v1195_v49  ;;  %v1258_v34 = vsub.f32 %v1250_v42, %v3082_v20  ;;  %v1361_v61 = vmul.f32 %v1353_v41, %v1273_v58  ;;  %v1368_v59 = vsub.f32 1.0, %v1360_v45  ;;  %v1814_v42 = vld [vmem:[%s2725_s25 + $0x38] sm:$0xff]  ;;  %s3211_s25 = scalar_lea.hbm %s3281_s4, %s1708_s30 }
 0x19d   : > { %v1381_v22 = vmax.f32 %v1373_v3, 0.0  ;;  %v1382_v10 = vmax.f32 %v1374_v29, 0.0  ;;  %v1383_v15 = vmax.f32 %v1375_v19, 0.0  ;;  %v1445_v18 = vmul.f32 %v1807_v51, %v1388_v62 }
 0x19e   : > { %v1259_v47 = vsub.f32 %v1251_v44, %v3084_v21  ;;  %v1266_v24 = vadd.f32 0.0729, %v1258_v34  ;;  %v1369_v26 = vsub.f32 1.0, %v1361_v61  ;;  %v1376_v48 = vmul.f32 0.5, %v1368_v59 }
 0x19f   : > { %v1355_v46 = vmul.f32 %v1803_v16, %v1347_v53  ;;  %v1389_v55 = vmin.f32 %v1381_v22, 1.0  ;;  %v1390_v43 = vmin.f32 %v1382_v10, 1.0  ;;  %v1391_v12 = vmin.f32 %v1383_v15, 1.0 }
 0x1a0   : > { %v1267_v20 = vadd.f32 0.0729, %v1259_v47  ;;  %v1274_v38 = vmul.f32 %v1266_v24, %v3103_v23  ;;  %v1377_v56 = vmul.f32 0.5, %v1369_v26  ;;  %v1384_v1 = vmax.f32 %v1376_v48, 0.0 }
 0x1a1   : > { %v1446_v5 = vmul.f32 %v1808_v7, %v1389_v55  ;;  %v1447_v14 = vmul.f32 %v1809_v57, %v1390_v43  ;;  %v1448_v21 = vmul.f32 %v1810_v17, %v1391_v12  ;;  %v1453_v35 = vsel %vm1420_vm4, %v1445_v18, 0.0 }
 0x1a2   : > { %v1275_v16 = vmul.f32 %v1267_v20, %v3110_v13  ;;  %v1362_v6 = vmul.f32 %v1354_v0, %v1274_v38  ;;  %v1385_v50 = vmax.f32 %v1377_v56, 0.0  ;;  %v1392_v28 = vmin.f32 %v1384_v1, 1.0 }
 0x1a3   : > { %v1454_v60 = vsel %vm1420_vm4, %v1446_v5, 0.0  ;;  %v1456_v23 = vsel %vm1420_vm4, %v1447_v14, 0.0  ;;  %v1458_v13 = vsel %vm1420_vm4, %v1448_v21, 0.0 }
 0x1a4   : > { %v1363_v41 = vmul.f32 %v1355_v46, %v1275_v16  ;;  %v1370_v62 = vsub.f32 1.0, %v1362_v6  ;;  %v1393_v11 = vmin.f32 %v1385_v50, 1.0  ;;  %v1449_v40 = vmul.f32 %v1811_v54, %v1392_v28 }
 0x1a5   : > { %v1455_v25 = vadd.f32 %v1454_v60, %v1453_v35 }
 0x1a6   : > { %v1371_v4 = vsub.f32 1.0, %v1363_v41  ;;  %v1378_v37 = vmul.f32 0.5, %v1370_v62  ;;  %v1450_v63 = vmul.f32 %v1812_v32, %v1393_v11  ;;  %v1460_v27 = vsel %vm1420_vm4, %v1449_v40, 0.0 }
 0x1a7   : > { %v1457_v36 = vadd.f32 %v1456_v23, %v1455_v25 }
 0x1a8   : > { %v1379_v39 = vmul.f32 0.5, %v1371_v4  ;;  %v1386_v53 = vmax.f32 %v1378_v37, 0.0  ;;  %v1462_v31 = vsel %vm1420_vm4, %v1450_v63, 0.0 }
 0x1a9   : > { %v1459_v8 = vadd.f32 %v1458_v13, %v1457_v36 }
 0x1aa   : > { %v1387_v2 = vmax.f32 %v1379_v39, 0.0  ;;  %v1394_v30 = vmin.f32 %v1386_v53, 1.0 }
 0x1ab   : > { %v1461_v33 = vadd.f32 %v1460_v27, %v1459_v8 }
 0x1ac   : > { %v1395_v52 = vmin.f32 %v1387_v2, 1.0  ;;  %v1451_v58 = vmul.f32 %v1813_v9, %v1394_v30 }
 0x1ad   : > { %v1463_v49 = vadd.f32 %v1462_v31, %v1461_v33 }
 0x1ae   : > { %v1452_v45 = vmul.f32 %v1814_v42, %v1395_v52  ;;  %v1464_v0 = vsel %vm1420_vm4, %v1451_v58, 0.0 }
 0x1af   : > { %v1465_v3 = vadd.f32 %v1464_v0, %v1463_v49 }
 0x1b0   : > { %v1466_v29 = vsel %vm1420_vm4, %v1452_v45, 0.0 }
 0x1b1   : > { %v1467_v19 = vadd.f32 %v1466_v29, %v1465_v3 }
 0x1b3   : > { %1468 = vadd.xlane.f32.xlu1 %v1467_v19 }
 0x1de   : > { %v1437_v44 = vpop.xlane.xlu0 %1436 }
 0x1df   : > { %v1438_v34 = vrot.slane %v1437_v44, 4 }
 0x1e1   : > { %v1439_v61 = vadd.f32 %v1438_v34, %v1437_v44 }
 0x1e3   : > { %v1440_v59 = vrot.slane %v1439_v61, 2 }
 0x1e5   : > { %v1441_v22 = vadd.f32 %v1440_v59, %v1439_v61 }
 0x1e7   : > { %v1442_v10 = vrot.slane %v1441_v22, 1 }
 0x1e9   : > { %v1443_v15 = vadd.f32 %v1442_v10, %v1441_v22 }
 0x1eb   : > { %1715 = vpush %v1443_v15 }
 0x1fb   : > { %v1493_v51 = vpop.xlane.xlu0 %1492 }
 0x1fc   : > { %v1494_v18 = vrot.slane %v1493_v51, 4 }
 0x1fe   : > { %v1495_v47 = vadd.f32 %v1494_v18, %v1493_v51 }
 0x200   : > { %v1496_v24 = vrot.slane %v1495_v47, 2 }
 0x202   : > { %v1497_v55 = vadd.f32 %v1496_v24, %v1495_v47 }
 0x204   : > { %v1498_v20 = vrot.slane %v1497_v55, 1 }
 0x206   : > { %v1499_v1 = vadd.f32 %v1498_v20, %v1497_v55 }
 0x21c   : > { %s1716_s7 = spop %1715 }
 0x240   : > { %v1469_v26 = vpop.xlane.xlu1 %1468 }
 0x241   : > { %v1470_v48 = vrot.slane %v1469_v26, 4 }
 0x243   : > { %v1471_v46 = vadd.f32 %v1470_v48, %v1469_v26 }
 0x245   : > { %v1472_v43 = vrot.slane %v1471_v46, 2 }
 0x247   : > { %v1473_v12 = vadd.f32 %v1472_v43, %v1471_v46 }
 0x249   : > { %v1474_v38 = vrot.slane %v1473_v12, 1 }
 0x24b   : > { %v1475_v56 = vadd.f32 %v1474_v38, %v1473_v12 }
 0x24d   : > { %1717 = vpush %v1475_v56 }
 0x24e   : > { %1719 = vpush %v1499_v1 }
 0x27e   : > { %s1718_s6 = spop %1717 }
 0x27f   : > { %s1720_s22 = spop %1719 }
 0x280   : > { %s1501_s9 = sadd.f32 1e-07, %s1720_s22  ;;  %s1512_s22 = scalar_lea.sflag [#allocation4], %s2235_s14 }
 0x282   : > { %v1502_v7 = vstv %s1501_s9  ;;  %s1905_s9 = scalar_lea.vmem %s3206_s11, 128 }
 0x283   : > { %1804 = vrcp.f32 %v1502_v7  ;;  %p1906_p13 = scmp.ne.s32.totalorder %s3206_s11, %s1905_s9 }
 0x285   : > { %p1907_p6 = pnand %p1906_p13, %p3360_p7 }
 0x287   : > { %p1908_p9 = pneg %p1907_p6 }
 0x28d   : > { %v1805_v5 = vpop.eup %1804 }
 0x28e   : > { %1721 = vpush %v1805_v5 }
 0x2bf   : > { %s1722_s1 = spop %1721 }
 0x2c0   : > { %s1505_s13 = smul.f32 %s1722_s1, %s1716_s7  ;;  %s2016_s7 = smov [#allocation8]  }
 0x2c1   : > { %s1508_s23 = smul.f32 %s1722_s1, %s1718_s6  ;;  %s1909_s6 = sshll.u32 %s2016_s7, 4  ;;  %s1910_s6 = int_to_ptr.vmem [resolvable:$false] %s1909_s6 }
 0x2c2   : > { %v1506_v57 = vstv %s1505_s13  ;;  %s1911_s29 = scalar_lea.vmem %s1910_s6, 256  ;;  %p1912_p12 = scmp.lt.s32.totalorder %s3206_s11, %s1910_s6 }
 0x2c3   : > { %1507 = vst [vmem:[%s296_s0] sm:$0xff] %v1506_v57  ;;  %v1509_v14 = vstv %s1508_s23  ;;  %p1913_p0 = scmp.lt.s32.totalorder %s1911_s29, %s1905_s9 }
 0x2c4   : > { %1510 = vst [vmem:[%s303_s12] sm:$0xff] %v1509_v14 }
 0x2c5   : > { %p1914_p8 = por %p1913_p0, %p1912_p12 }
 0x2c7   : > { %p1915_p10 = pnand %p1914_p8, %p1908_p9 }
 0x2c9   : > { %1918 = shalt.err (!%p1915_p10)
}
 0x2ca   : > { %s1919_s30 = scalar_lea.hbm %s3204_s5, 128  ;;  %s1923_s28 = scalar_lea.hbm %s3280_s3, 256 }
 0x2cb   : > { %p1920_p11 = scmp.ne.s32.totalorder %s3204_s5, %s1919_s30  ;;  %p1924_p5 = scmp.lt.u32.totalorder %s3204_s5, %s3280_s3 }
 0x2cc   : > { %p1925_p2 = scmp.lt.u32.totalorder %s1923_s28, %s1919_s30  ;;  %p1927_p13 = scmp.lt.u32.totalorder %s1919_s30, %s3204_s5 }
 0x2cd   : > { %p1921_p4 = pnand %p1920_p11, %p3360_p7 }
 0x2ce   : > { %p1926_p1 = por %p1925_p2, %p1924_p5 }
 0x2cf   : > { %p1922_p3 = pneg %p1921_p4 }
 0x2d0   : > { %p1928_p6 = por %p1927_p13, %p1926_p1 }
 0x2d2   : > { %p1929_p9 = pnand %p1928_p6, %p1922_p3 }
 0x2d4   : > { %1932 = shalt.err (!%p1929_p9)
}
 0x2d5   : > { %1729 = dma.vmem_to_hbm [thread:$0]  (%p3360_p7), %s3206_s11, 128, %s3204_s5, %s1512_s22  }
 0x2d6   : > { %s1517_s13 = scalar_lea.sflag [#allocation10], %s2235_s14  ;;  %s1933_s23 = scalar_lea.vmem %s3213_s10, 128 }
 0x2d7   : > { %p1934_p12 = scmp.ne.s32.totalorder %s3213_s10, %s1933_s23  ;;  %s2017_s19 = smov [#allocation9]  }
 0x2d8   : > { %s1937_s20 = sshll.u32 %s2017_s19, 4  ;;  %s1938_s20 = int_to_ptr.vmem [resolvable:$false] %s1937_s20 }
 0x2d9   : > { %p1935_p0 = pnand %p1934_p12, %p3360_p7  ;;  %s1939_s9 = scalar_lea.vmem %s1938_s20, 256 }
 0x2da   : > { %p1940_p10 = scmp.lt.s32.totalorder %s3213_s10, %s1938_s20  ;;  %p1941_p11 = scmp.lt.s32.totalorder %s1939_s9, %s1933_s23 }
 0x2db   : > { %p1936_p8 = pneg %p1935_p0 }
 0x2dc   : > { %p1942_p4 = por %p1941_p11, %p1940_p10 }
 0x2de   : > { %p1943_p3 = pnand %p1942_p4, %p1936_p8 }
 0x2e0   : > { %1946 = shalt.err (!%p1943_p3)
}
 0x2e1   : > { %s1947_s14 = scalar_lea.hbm %s3211_s25, 128  ;;  %s1951_s22 = scalar_lea.hbm %s3281_s4, 256 }
 0x2e2   : > { %p1948_p5 = scmp.ne.s32.totalorder %s3211_s25, %s1947_s14  ;;  %p1952_p13 = scmp.lt.u32.totalorder %s3211_s25, %s3281_s4 }
 0x2e3   : > { %p1953_p6 = scmp.lt.u32.totalorder %s1951_s22, %s1947_s14  ;;  %p1955_p12 = scmp.lt.u32.totalorder %s1947_s14, %s3211_s25 }
 0x2e4   : > { %p1949_p2 = pnand %p1948_p5, %p3360_p7 }
 0x2e5   : > { %p1954_p9 = por %p1953_p6, %p1952_p13 }
 0x2e6   : > { %p1950_p1 = pneg %p1949_p2 }
 0x2e7   : > { %p1956_p0 = por %p1955_p12, %p1954_p9 }
 0x2e9   : > { %p1957_p8 = pnand %p1956_p0, %p1950_p1 }
 0x2eb   : > { %1960 = shalt.err (!%p1957_p8)
}
 0x2ec   : > { %1730 = dma.vmem_to_hbm [thread:$0]  (%p3360_p7), %s3213_s10, 128, %s3211_s25, %s1517_s13  }
 0x2ed PF: > { %s1555_s29 = sand.u32 1, %s1995_s15   ;;  %p3361_p10 = scmp.ne.s32.totalorder %s3312_s27, 0 }
 0x2ee   : > { %p3362_p11 = scmp.ge.s32.totalorder %s2007_s18, 2  ;;  %s1556_s30 = scalar_lea.sflag [#allocation4], %s1555_s29 }
 0x2f0   : > { %p1744_p4 = pnand %p3362_p11, %p3361_p10 }
 0x2f2   : > { %1986 = dma.done.wait (!%p1744_p4), %s1556_s30, 128  }
 0x2f3   : > { %1988 = vsyncadd (!%p1744_p4), %s1556_s30, 4294967168  ;;  %s1565_s0 = scalar_lea.sflag [#allocation10], %s1555_s29 }
 0x2f4   : > { %1990 = dma.done.wait (!%p1744_p4), %s1565_s0, 128  }
 0x2f5   : > { %1992 = vsyncadd (!%p1744_p4), %s1565_s0, 4294967168  ;;  %p24_p7 = scmp.ge.s32.totalorder %s2068_s21, 4   ;;  %s3363_s15 = smov %s1999_s16 }
 0x2f6   : > { %s3364_s16 = smov %s2003_s17  ;;  %s3365_s17 = smov %s2080_s24 }
 0x2f7   : > { %s3366_s18 = smov %s2068_s21  ;;  %26 = sbr.rel (!%p24_p7) target bundleno = 12 (0xc), region = 118 }
 0x2fe   :  { %1570 = vsyncpa [#allocation3], 1 }
 0x2ff   :  { %1572 = vsyncpa [#allocation3 + $0x1], 1 }
 0x300   :  { %1573 = vsyncpa [#allocation6], 1 }
 0x301   :  { %1575 = vsyncpa [#allocation6 + $0x1], 1 }
 0x302   :  { %1576 = vsyncpa [#allocation4], 1 }
 0x303   :  { %1578 = vsyncpa [#allocation4 + $0x1], 1 }
 0x304   :  { %1579 = vsyncpa [#allocation10], 1 }
 0x305   :  { %1581 = vsyncpa [#allocation10 + $0x1], 1 }

</bundles_post_ra>
